<compile_context>
chip_gen: v7x
topology: tpu7x:2x2x1
jax: 0.10.0
libtpu: 0.0.40
codegen_flags: <defaults>
</compile_context>

<pallas_src>
import functools

import numpy as np
import jax
import jax.numpy as jnp
from jax import lax
from jax.experimental import pallas as pl
from jax.experimental.pallas import tpu as pltpu

_SQRT2 = 1.4142135623730951


def _gelu_exact(x):
    # matches torch.nn.GELU() (erf formulation, not tanh approximation)
    return 0.5 * x * (1.0 + lax.erf(x / _SQRT2))


# ----------------------------- fused kernel ---------------------------------


def _space3d_fused_kernel(x_ref, w_up_ref, ln_avg_ref, ln_g_ref, ln_b_ref,
                          w_bi_ref, b_bi_ref, w_bo_ref, b_bo_ref,
                          w_h1_ref, b_h1_ref, w_h2_ref, b_h2_ref,
                          w_v1_ref, b_v1_ref, w_v2_ref, b_v2_ref,
                          head_ref, pack_ref, *, eps):
    f32 = jnp.float32
    x = x_ref[...]                                            # (TM, D_in*Cin)

    # 1) ConvTranspose3d(kernel == stride, no bias) as a single matmul.  Weight
    #    columns are pre-permuted to (hi, wi, do, c): the sub-voxel interleave
    #    and the voxel->BEV regroup are baked into the layout.
    y = jnp.dot(x, w_up_ref[...], preferred_element_type=f32)  # (TM, V*C)

    # 2) channels-first LayerNorm over every C-channel group, fully vectorized:
    #    per-group mean / E[x^2] via one block-diagonal averaging matmul (MXU),
    #    single full-width normalize (no per-group XLU reductions, no narrow
    #    masked stores; gamma/beta pre-tiled host-side).
    mu = jnp.dot(y, ln_avg_ref[...], preferred_element_type=f32)
    ex2 = jnp.dot(y * y, ln_avg_ref[...], preferred_element_type=f32)
    var = jnp.maximum(ex2 - mu * mu, 0.0)          # clamp f32 cancellation
    z = (y - mu) * lax.rsqrt(var + eps) * ln_g_ref[...] + ln_b_ref[...]

    # 3) VoxelBevUNet stand-in: voxel -> BEV (1x1 + GELU) -> voxel (1x1),
    #    block-diagonal over the kh*kw BEV sub-pixel groups.
    bev = _gelu_exact(jnp.dot(z, w_bi_ref[...], preferred_element_type=f32)
                      + b_bi_ref[...])                        # (TM, G*bev_dim)
    vox = jnp.dot(bev, w_bo_ref[...], preferred_element_type=f32) + b_bo_ref[...]

    # 4) fused prob+cls head MLP, block-diagonal over all (hi, wi, do) groups;
    #    num_classes is padded so this is one full lane-dense store.
    h = _gelu_exact(jnp.dot(vox, w_h1_ref[...], preferred_element_type=f32)
                    + b_h1_ref[...])
    head = jnp.dot(h, w_h2_ref[...], preferred_element_type=f32) + b_h2_ref[...]
    head_ref[...] = head.astype(head_ref.dtype)

    # 5) BEV velocity MLP; its (padded) output is packed next to bev_feat so
    #    the second output is also a single lane-dense store.
    hv = _gelu_exact(jnp.dot(bev, w_v1_ref[...], preferred_element_type=f32)
                     + b_v1_ref[...])
    vel = jnp.dot(hv, w_v2_ref[...], preferred_element_type=f32) + b_v2_ref[...]
    pack_ref[...] = jnp.concatenate([bev, vel], axis=-1).astype(pack_ref.dtype)


def _fused_forward(x2d, params, head_cols, pack_cols, eps, row_cap=512):
    """One pallas_call over row tiles of the (b, h, w)-flattened input."""
    n, kin = x2d.shape
    n_al = ((n + 7) // 8) * 8                 # sublane-align rows
    tm = min(n_al, row_cap)                   # tile == n for small problems
    n_pad = pl.cdiv(n_al, tm) * tm
    if n_pad != n:
        x2d = jnp.pad(x2d, ((0, n_pad - n), (0, 0)))

    in_specs = [pl.BlockSpec((tm, kin), lambda i: (i, 0))]
    in_specs += [pl.BlockSpec(p.shape, lambda i: (0, 0)) for p in params]
    out_specs = (pl.BlockSpec((tm, head_cols), lambda i: (i, 0)),
                 pl.BlockSpec((tm, pack_cols), lambda i: (i, 0)))

    head, packed = pl.pallas_call(
        functools.partial(_space3d_fused_kernel, eps=eps),
        out_shape=(jax.ShapeDtypeStruct((n_pad, head_cols), jnp.float32),
                   jax.ShapeDtypeStruct((n_pad, pack_cols), jnp.float32)),
        grid=(n_pad // tm,),
        in_specs=in_specs,
        out_specs=out_specs,
        compiler_params=pltpu.CompilerParams(dimension_semantics=("parallel",)),
    )(x2d, *params)
    if n_pad != n:
        head, packed = head[:n], packed[:n]
    return head, packed


# ------------------------------- the model ----------------------------------


class Space3DNetPallas:
    """Space3DNet forward re-implemented with a single fused Pallas TPU kernel."""

    def __init__(self, in_channels, feat_channels=8, bev_dim=16,
                 in_shape=(2, 4, 4), out_shape=(4, 8, 8), num_classes=6,
                 bev_feat_only=False, with_bev_vel=True, key=None):
        self.in_channels = in_channels
        self.feat_channels = feat_channels
        self.bev_dim = bev_dim
        self.in_shape = tuple(in_shape)
        self.out_shape = tuple(out_shape)
        self.num_classes = num_classes
        self.bev_feat_only = bev_feat_only
        self.with_bev_vel = with_bev_vel
        self.scale_list = tuple(o // i for o, i in zip(out_shape, in_shape))
        self.scale = self.scale_list[0] * self.scale_list[1] * self.scale_list[2]
        assert self.scale > 1, "this configuration exercises the upsampler path"

        C = feat_channels
        Cin = in_channels
        NC = num_classes
        D_in = self.in_shape[0]
        Dout = self.out_shape[0]
        kd, kh, kw = self.scale_list
        G = kh * kw              # BEV sub-pixel groups per input (h, w) column
        V = G * Dout             # sub-voxel (C-channel) groups per kernel row
        NCp = ((NC + 7) // 8) * 8
        self.G, self.V, self.NCp = G, V, NCp
        self.eps = 1e-5

        key = jax.random.PRNGKey(0) if key is None else key
        ks = jax.random.split(key, 12)

        def init(k, shape, scale=0.02):
            return scale * jax.random.normal(k, shape, dtype=jnp.float32)

        # --- raw (unpacked) parameters, torch-style shapes ---
        # upsampler: ConvTranspose3d weight (Cin, Cout, kd, kh, kw), no bias
        w_ct = init(ks[0], (Cin, C, kd, kh, kw))
        ln_gamma = jnp.ones((C,), jnp.float32)
        ln_beta = jnp.zeros((C,), jnp.float32)
        # VoxelBevUNet stand-in: 1x1 projections voxel-column <-> BEV feature
        w_bev_in = init(ks[1], (Dout * C, bev_dim))
        b_bev_in = jnp.zeros((1, bev_dim), jnp.float32)
        w_bev_out = init(ks[2], (bev_dim, Dout * C))
        b_bev_out = jnp.zeros((1, Dout * C), jnp.float32)
        # prob_branch: Linear(C, 2C) GELU Linear(2C, 1)
        w1p, b1p = init(ks[3], (C, 2 * C)), init(ks[4], (1, 2 * C))
        w2p, b2p = init(ks[5], (2 * C, 1)), init(ks[6], (1, 1))
        # cls_branch: Linear(C, 2C) GELU Linear(2C, NC-1)
        w1c, b1c = init(ks[7], (C, 2 * C)), init(ks[8], (1, 2 * C))
        w2c = init(ks[9], (2 * C, NC - 1))
        b2c = jnp.zeros((1, NC - 1), jnp.float32)
        # bev_vel_branch: Conv2d(bev,bev,1) GELU Conv2d(bev,2,1).  Built
        # unconditionally so the fused-kernel signature is fixed; only returned
        # when with_bev_vel=True (matching the original module's output).
        w1_vel = init(ks[10], (bev_dim, bev_dim))
        b1_vel = jnp.zeros((1, bev_dim), jnp.float32)
        w2_vel = init(ks[11], (bev_dim, 2))
        b2_vel = jnp.zeros((1, 2), jnp.float32)

        self.ref = dict(w_ct=w_ct, ln_gamma=ln_gamma, ln_beta=ln_beta,
                        w_bev_in=w_bev_in, b_bev_in=b_bev_in,
                        w_bev_out=w_bev_out, b_bev_out=b_bev_out,
                        w1p=w1p, b1p=b1p, w2p=w2p, b2p=b2p,
                        w1c=w1c, b1c=b1c, w2c=w2c, b2c=b2c,
                        w1_vel=w1_vel, b1_vel=b1_vel, w2_vel=w2_vel, b2_vel=b2_vel)

        # --- packed parameters for the fused kernel (all free at init time) ---
        # Upsample matrix: rows (d, cin), cols (g=(hi,wi), do=d*kd+di, c); the
        # interleave / BEV-regroup transposes become this column permutation.
        w_sub = jnp.transpose(w_ct, (0, 3, 4, 2, 1)).reshape(Cin, G, kd, C)
        w_full = jnp.zeros((D_in, Cin, G, Dout, C), jnp.float32)
        for d in range(D_in):
            w_full = w_full.at[d, :, :, d * kd:(d + 1) * kd, :].set(w_sub)
        w_up = w_full.reshape(D_in * Cin, V * C)

        eye_g = jnp.eye(G, dtype=jnp.float32)
        eye_v = jnp.eye(V, dtype=jnp.float32)

        # LayerNorm: block-diag averaging matrix + pre-tiled gamma/beta.
        ln_avg = jnp.kron(eye_v, jnp.full((C, C), 1.0 / C, jnp.float32))
        ln_g_t = jnp.tile(ln_gamma[None, :], (1, V))
        ln_b_t = jnp.tile(ln_beta[None, :], (1, V))

        # BEV in/out, block-diagonal over the G BEV sub-pixel groups.
        w_bi = jnp.kron(eye_g, w_bev_in)               # (V*C, G*bev_dim)
        b_bi = jnp.tile(b_bev_in, (1, G))
        w_bo = jnp.kron(eye_g, w_bev_out)              # (G*bev_dim, V*C)
        b_bo = jnp.tile(b_bev_out, (1, G))

        # Fused prob+cls head: concat first layers, block-diag second layer
        # padded to NCp classes, then block-diag over the V sub-voxel groups.
        w1_head = jnp.concatenate([w1p, w1c], axis=1)              # (C, 4C)
        b1_head = jnp.concatenate([b1p, b1c], axis=1)              # (1, 4C)
        w2_head = jnp.zeros((4 * C, NCp), jnp.float32)
        w2_head = w2_head.at[:2 * C, 0:1].set(w2p)
        w2_head = w2_head.at[2 * C:, 1:NC].set(w2c)
        b2_head = jnp.zeros((1, NCp), jnp.float32)
        b2_head = b2_head.at[:, 0:1].set(b2p)
        b2_head = b2_head.at[:, 1:NC].set(b2c)
        w_h1 = jnp.kron(eye_v, w1_head)                # (V*C, V*4C)
        b_h1 = jnp.tile(b1_head, (1, V))
        w_h2 = jnp.kron(eye_v, w2_head)                # (V*4C, V*NCp)
        b_h2 = jnp.tile(b2_head, (1, V))

        # Velocity MLP, second layer padded to bev_dim columns so the packed
        # [bev_feat | vel] output slab is lane-dense.
        w2_vel_p = jnp.zeros((bev_dim, bev_dim), jnp.float32).at[:, :2].set(w2_vel)
        b2_vel_p = jnp.zeros((1, bev_dim), jnp.float32).at[:, :2].set(b2_vel)
        w_v1 = jnp.kron(eye_g, w1_vel)                 # (G*bev, G*bev)
        b_v1 = jnp.tile(b1_vel, (1, G))
        w_v2 = jnp.kron(eye_g, w2_vel_p)               # (G*bev, G*bev)
        b_v2 = jnp.tile(b2_vel_p, (1, G))

        self.params = (w_up, ln_avg, ln_g_t, ln_b_t, w_bi, b_bi, w_bo, b_bo,
                       w_h1, b_h1, w_h2, b_h2, w_v1, b_v1, w_v2, b_v2)
        self.head_cols = V * NCp                       # 128 for this config
        self.pack_cols = 2 * G * bev_dim               # 128 for this config

    def __call__(self, x, bev_only=False, reg_only=False):
        # x: (B, Cin, D_in, H_in, W_in)  -- PyTorch NCDHW
        B, Cin, D, H, W = x.shape
        kd, kh, kw = self.scale_list
        Dout, Hout, Wout = self.out_shape
        NC, NCp = self.num_classes, self.NCp
        BD = self.bev_dim
        G, V = self.G, self.V

        # Tiny one-time layout plumbing: rows = (b, h, w), cols = (d, cin).
        x2d = jnp.transpose(x, (0, 3, 4, 2, 1)).reshape(B * H * W, D * Cin)

        head_flat, packed = _fused_forward(
            x2d, self.params, self.head_cols, self.pack_cols, self.eps)

        # unpack [bev_feat | vel] and restore the PyTorch output conventions
        bev_all = packed[:, :G * BD].reshape(B, H, W, kh, kw, BD)
        bev_feat = jnp.transpose(bev_all, (0, 5, 1, 3, 2, 4)).reshape(
            B, BD, Hout, Wout)                                   # (B,bev,H,W)
        space_embed = bev_feat
        if self.bev_feat_only or bev_only:
            return None, bev_feat

        outputs, vel3D, out_bev_vel = None, None, None
        if not reg_only:
            head = head_flat.reshape(B, H, W, kh, kw, Dout, NCp)[..., :NC]
            outputs = jnp.transpose(head, (0, 2, 4, 1, 3, 5, 6)).reshape(
                B, Wout, Hout, Dout, NC)                         # (B,W,H,D,NC)
        if self.with_bev_vel:
            vel = packed[:, G * BD:].reshape(B, H, W, kh, kw, BD)[..., :2]
            out_bev_vel = jnp.transpose(vel, (0, 2, 4, 1, 3, 5)).reshape(
                B, Wout, Hout, 2)                                # (B,W,H,2)
        return outputs, space_embed, vel3D, out_bev_vel, bev_feat


# --------------------------- pure-JAX reference ------------------------------


def _reference_forward(model, x):
    """Plain-JAX (no Pallas) reference of the same forward, for validation."""
    p = model.ref
    hp = lax.Precision.HIGHEST
    B, Cin, D, H, W = x.shape
    kd, kh, kw = model.scale_list
    C = model.feat_channels
    Dout, Hout, Wout = model.out_shape
    BD = model.bev_dim

    # ConvTranspose3d(kernel == stride, padding=0, bias=False)
    up = jnp.einsum('bidhw,icxyz->bcdxhywz', x, p['w_ct'], precision=hp)
    up = up.reshape(B, C, Dout, Hout, Wout)
    # channels-first LayerNorm over C (biased variance, eps=1e-5)
    mean = up.mean(axis=1, keepdims=True)
    var = ((up - mean) ** 2).mean(axis=1, keepdims=True)
    up = (up - mean) / jnp.sqrt(var + 1e-5)
    up = up * p['ln_gamma'].reshape(1, C, 1, 1, 1) + p['ln_beta'].reshape(1, C, 1, 1, 1)
    # VoxelBevUNet stand-in
    bev_in = jnp.transpose(up, (0, 3, 4, 2, 1)).reshape(B * Hout * Wout, Dout * C)
    bev_flat = _gelu_exact(jnp.dot(bev_in, p['w_bev_in'], precision=hp) + p['b_bev_in'])
    vox_back = jnp.dot(bev_flat, p['w_bev_out'], precision=hp) + p['b_bev_out']
    bev_feat = jnp.transpose(bev_flat.reshape(B, Hout, Wout, BD), (0, 3, 1, 2))
    x_vox = jnp.transpose(vox_back.reshape(B, Hout, Wout, Dout, C), (0, 3, 1, 2, 4))
    # prob / cls heads
    flat = x_vox.reshape(-1, C)
    prob = jnp.dot(_gelu_exact(jnp.dot(flat, p['w1p'], precision=hp) + p['b1p']),
                   p['w2p'], precision=hp) + p['b2p']
    cls = jnp.dot(_gelu_exact(jnp.dot(flat, p['w1c'], precision=hp) + p['b1c']),
                  p['w2c'], precision=hp) + p['b2c']
    out_flat = jnp.concatenate([prob, cls], axis=-1)
    outputs = jnp.transpose(out_flat.reshape(B, Dout, Hout, Wout, -1), (0, 3, 2, 1, 4))
    # bev velocity branch
    velh = _gelu_exact(jnp.dot(bev_flat, p['w1_vel'], precision=hp) + p['b1_vel'])
    vel = jnp.dot(velh, p['w2_vel'], precision=hp) + p['b2_vel']
    out_bev_vel = jnp.transpose(vel.reshape(B, Hout, Wout, 2), (0, 2, 1, 3))
    return outputs, bev_feat, out_bev_vel


# --------------------------------- main --------------------------------------

if __name__ == "__main__":
    B = 2
    in_channels = 16
    in_shape = (2, 4, 4)
    out_shape = (4, 8, 8)
    num_classes = 6

    key = jax.random.PRNGKey(0)
    k_param, k_x = jax.random.split(key)

    model = Space3DNetPallas(in_channels=in_channels, feat_channels=8, bev_dim=16,
                             in_shape=in_shape, out_shape=out_shape,
                             num_classes=num_classes, with_bev_vel=True, key=k_param)

    x = jax.random.normal(k_x, (B, in_channels) + in_shape, dtype=jnp.float32)

    fwd = jax.jit(model.__call__)
    outputs, space_embed, vel3D, out_bev_vel, bev_feat = fwd(x)
    for t in (outputs, space_embed, out_bev_vel, bev_feat):
        jax.block_until_ready(t)

    assert outputs.shape == (B, out_shape[2], out_shape[1], out_shape[0], num_classes)
    assert bev_feat.shape == (B, 16, out_shape[1], out_shape[2])
    assert out_bev_vel.shape == (B, out_shape[2], out_shape[1], 2)
    assert vel3D is None

    # validate the fused kernel + weight-layout folding against a plain-JAX ref
    ref_out, ref_bev, ref_vel = _reference_forward(model, x)
    np.testing.assert_allclose(np.asarray(outputs), np.asarray(ref_out),
                               rtol=5e-3, atol=5e-4)
    np.testing.assert_allclose(np.asarray(bev_feat), np.asarray(ref_bev),
                               rtol=5e-3, atol=5e-4)
    np.testing.assert_allclose(np.asarray(out_bev_vel), np.asarray(ref_vel),
                               rtol=5e-3, atol=5e-4)

    print("KERNEL_OK")
</pallas_src>

<mosaic_0001>
module attributes {stable_mosaic.version = 11 : i64} {
  func.func @_space3d_fused_kernel(%arg0: i32, %arg1: memref<32x32xf32, #tpu.memory_space<vmem>>, %arg2: memref<32x128xf32, #tpu.memory_space<vmem>>, %arg3: memref<128x128xf32, #tpu.memory_space<vmem>>, %arg4: memref<1x128xf32, #tpu.memory_space<vmem>>, %arg5: memref<1x128xf32, #tpu.memory_space<vmem>>, %arg6: memref<128x64xf32, #tpu.memory_space<vmem>>, %arg7: memref<1x64xf32, #tpu.memory_space<vmem>>, %arg8: memref<64x128xf32, #tpu.memory_space<vmem>>, %arg9: memref<1x128xf32, #tpu.memory_space<vmem>>, %arg10: memref<128x512xf32, #tpu.memory_space<vmem>>, %arg11: memref<1x512xf32, #tpu.memory_space<vmem>>, %arg12: memref<512x128xf32, #tpu.memory_space<vmem>>, %arg13: memref<1x128xf32, #tpu.memory_space<vmem>>, %arg14: memref<64x64xf32, #tpu.memory_space<vmem>>, %arg15: memref<1x64xf32, #tpu.memory_space<vmem>>, %arg16: memref<64x64xf32, #tpu.memory_space<vmem>>, %arg17: memref<1x64xf32, #tpu.memory_space<vmem>>, %arg18: memref<32x128xf32, #tpu.memory_space<vmem>>, %arg19: memref<32x128xf32, #tpu.memory_space<vmem>>) attributes {dimension_semantics = [#tpu.dimension_semantics<parallel>], iteration_bounds = array<i64: 1>, scalar_prefetch = 0 : i64, scratch_operands = 0 : i64, tpu.core_type = #tpu.core_type<tc>, window_params = [{transform_indices = @transform_0, window_bounds = array<i64: 32, 32>}, {pipeline_mode = #tpu.pipeline_mode<synchronous>, transform_indices = @transform_1, window_bounds = array<i64: 32, 128>}, {pipeline_mode = #tpu.pipeline_mode<synchronous>, transform_indices = @transform_2, window_bounds = array<i64: 128, 128>}, {pipeline_mode = #tpu.pipeline_mode<synchronous>, transform_indices = @transform_3, window_bounds = array<i64: 1, 128>}, {pipeline_mode = #tpu.pipeline_mode<synchronous>, transform_indices = @transform_4, window_bounds = array<i64: 1, 128>}, {pipeline_mode = #tpu.pipeline_mode<synchronous>, transform_indices = @transform_5, window_bounds = array<i64: 128, 64>}, {pipeline_mode = #tpu.pipeline_mode<synchronous>, transform_indices = @transform_6, window_bounds = array<i64: 1, 64>}, {pipeline_mode = #tpu.pipeline_mode<synchronous>, transform_indices = @transform_7, window_bounds = array<i64: 64, 128>}, {pipeline_mode = #tpu.pipeline_mode<synchronous>, transform_indices = @transform_8, window_bounds = array<i64: 1, 128>}, {pipeline_mode = #tpu.pipeline_mode<synchronous>, transform_indices = @transform_9, window_bounds = array<i64: 128, 512>}, {pipeline_mode = #tpu.pipeline_mode<synchronous>, transform_indices = @transform_10, window_bounds = array<i64: 1, 512>}, {pipeline_mode = #tpu.pipeline_mode<synchronous>, transform_indices = @transform_11, window_bounds = array<i64: 512, 128>}, {pipeline_mode = #tpu.pipeline_mode<synchronous>, transform_indices = @transform_12, window_bounds = array<i64: 1, 128>}, {pipeline_mode = #tpu.pipeline_mode<synchronous>, transform_indices = @transform_13, window_bounds = array<i64: 64, 64>}, {pipeline_mode = #tpu.pipeline_mode<synchronous>, transform_indices = @transform_14, window_bounds = array<i64: 1, 64>}, {pipeline_mode = #tpu.pipeline_mode<synchronous>, transform_indices = @transform_15, window_bounds = array<i64: 64, 64>}, {pipeline_mode = #tpu.pipeline_mode<synchronous>, transform_indices = @transform_16, window_bounds = array<i64: 1, 64>}, {transform_indices = @transform_17, window_bounds = array<i64: 32, 128>}, {transform_indices = @transform_18, window_bounds = array<i64: 32, 128>}]} {
    %c0 = arith.constant 0 : index
    %c0_0 = arith.constant 0 : index
    %0 = vector.load %arg1[%c0, %c0_0] : memref<32x32xf32, #tpu.memory_space<vmem>>, vector<32x32xf32>
    %c0_1 = arith.constant 0 : index
    %c0_2 = arith.constant 0 : index
    %1 = vector.load %arg2[%c0_1, %c0_2] : memref<32x128xf32, #tpu.memory_space<vmem>>, vector<32x128xf32>
    %cst = arith.constant dense<0.000000e+00> : vector<32x128xf32>
    %2 = tpu.matmul %0, %1, %cst {dimension_numbers = #tpu.dot_dimension_numbers<[1], [0], [0], [1], [0, 0, 1, 1], [], []>} : vector<32x32xf32>, vector<32x128xf32>, vector<32x128xf32> -> vector<32x128xf32>
    %c0_3 = arith.constant 0 : index
    %c0_4 = arith.constant 0 : index
    %3 = vector.load %arg3[%c0_3, %c0_4] : memref<128x128xf32, #tpu.memory_space<vmem>>, vector<128x128xf32>
    %cst_5 = arith.constant dense<0.000000e+00> : vector<32x128xf32>
    %4 = tpu.matmul %2, %3, %cst_5 {dimension_numbers = #tpu.dot_dimension_numbers<[1], [0], [0], [1], [0, 0, 1, 1], [], []>} : vector<32x128xf32>, vector<128x128xf32>, vector<32x128xf32> -> vector<32x128xf32>
    %5 = arith.mulf %2, %2 : vector<32x128xf32>
    %c0_6 = arith.constant 0 : index
    %c0_7 = arith.constant 0 : index
    %6 = vector.load %arg3[%c0_6, %c0_7] : memref<128x128xf32, #tpu.memory_space<vmem>>, vector<128x128xf32>
    %cst_8 = arith.constant dense<0.000000e+00> : vector<32x128xf32>
    %7 = tpu.matmul %5, %6, %cst_8 {dimension_numbers = #tpu.dot_dimension_numbers<[1], [0], [0], [1], [0, 0, 1, 1], [], []>} : vector<32x128xf32>, vector<128x128xf32>, vector<32x128xf32> -> vector<32x128xf32>
    %8 = arith.mulf %4, %4 : vector<32x128xf32>
    %9 = arith.subf %7, %8 : vector<32x128xf32>
    %cst_9 = arith.constant 0.000000e+00 : f32
    %10 = vector.broadcast %cst_9 : f32 to vector<32x128xf32>
    %11 = arith.maximumf %9, %10 : vector<32x128xf32>
    %12 = arith.subf %2, %4 : vector<32x128xf32>
    %cst_10 = arith.constant 9.99999974E-6 : f32
    %13 = vector.broadcast %cst_10 : f32 to vector<32x128xf32>
    %14 = arith.addf %11, %13 : vector<32x128xf32>
    %15 = math.rsqrt %14 : vector<32x128xf32>
    %16 = arith.mulf %12, %15 : vector<32x128xf32>
    %c0_11 = arith.constant 0 : index
    %c0_12 = arith.constant 0 : index
    %17 = vector.load %arg4[%c0_11, %c0_12] : memref<1x128xf32, #tpu.memory_space<vmem>>, vector<1x128xf32>
    %18 = vector.broadcast %17 : vector<1x128xf32> to vector<32x128xf32>
    %19 = arith.mulf %16, %18 : vector<32x128xf32>
    %c0_13 = arith.constant 0 : index
    %c0_14 = arith.constant 0 : index
    %20 = vector.load %arg5[%c0_13, %c0_14] : memref<1x128xf32, #tpu.memory_space<vmem>>, vector<1x128xf32>
    %21 = vector.broadcast %20 : vector<1x128xf32> to vector<32x128xf32>
    %22 = arith.addf %19, %21 : vector<32x128xf32>
    %c0_15 = arith.constant 0 : index
    %c0_16 = arith.constant 0 : index
    %23 = vector.load %arg6[%c0_15, %c0_16] : memref<128x64xf32, #tpu.memory_space<vmem>>, vector<128x64xf32>
    %cst_17 = arith.constant dense<0.000000e+00> : vector<32x64xf32>
    %24 = tpu.matmul %22, %23, %cst_17 {dimension_numbers = #tpu.dot_dimension_numbers<[1], [0], [0], [1], [0, 0, 1, 1], [], []>} : vector<32x128xf32>, vector<128x64xf32>, vector<32x64xf32> -> vector<32x64xf32>
    %c0_18 = arith.constant 0 : index
    %c0_19 = arith.constant 0 : index
    %25 = vector.load %arg7[%c0_18, %c0_19] : memref<1x64xf32, #tpu.memory_space<vmem>>, vector<1x64xf32>
    %26 = vector.broadcast %25 : vector<1x64xf32> to vector<32x64xf32>
    %27 = arith.addf %24, %26 : vector<32x64xf32>
    %cst_20 = arith.constant 5.000000e-01 : f32
    %28 = vector.broadcast %cst_20 : f32 to vector<32x64xf32>
    %29 = arith.mulf %28, %27 : vector<32x64xf32>
    %cst_21 = arith.constant 1.41421354 : f32
    %30 = vector.broadcast %cst_21 : f32 to vector<32x64xf32>
    %31 = arith.divf %27, %30 : vector<32x64xf32>
    %32 = math.erf %31 : vector<32x64xf32>
    %cst_22 = arith.constant 1.000000e+00 : f32
    %33 = vector.broadcast %cst_22 : f32 to vector<32x64xf32>
    %34 = arith.addf %33, %32 : vector<32x64xf32>
    %35 = arith.mulf %29, %34 : vector<32x64xf32>
    %c0_23 = arith.constant 0 : index
    %c0_24 = arith.constant 0 : index
    %36 = vector.load %arg8[%c0_23, %c0_24] : memref<64x128xf32, #tpu.memory_space<vmem>>, vector<64x128xf32>
    %cst_25 = arith.constant dense<0.000000e+00> : vector<32x128xf32>
    %37 = tpu.matmul %35, %36, %cst_25 {dimension_numbers = #tpu.dot_dimension_numbers<[1], [0], [0], [1], [0, 0, 1, 1], [], []>} : vector<32x64xf32>, vector<64x128xf32>, vector<32x128xf32> -> vector<32x128xf32>
    %c0_26 = arith.constant 0 : index
    %c0_27 = arith.constant 0 : index
    %38 = vector.load %arg9[%c0_26, %c0_27] : memref<1x128xf32, #tpu.memory_space<vmem>>, vector<1x128xf32>
    %39 = vector.broadcast %38 : vector<1x128xf32> to vector<32x128xf32>
    %40 = arith.addf %37, %39 : vector<32x128xf32>
    %c0_28 = arith.constant 0 : index
    %c0_29 = arith.constant 0 : index
    %41 = vector.load %arg10[%c0_28, %c0_29] : memref<128x512xf32, #tpu.memory_space<vmem>>, vector<128x512xf32>
    %cst_30 = arith.constant dense<0.000000e+00> : vector<32x512xf32>
    %42 = tpu.matmul %40, %41, %cst_30 {dimension_numbers = #tpu.dot_dimension_numbers<[1], [0], [0], [1], [0, 0, 1, 1], [], []>} : vector<32x128xf32>, vector<128x512xf32>, vector<32x512xf32> -> vector<32x512xf32>
    %c0_31 = arith.constant 0 : index
    %c0_32 = arith.constant 0 : index
    %43 = vector.load %arg11[%c0_31, %c0_32] : memref<1x512xf32, #tpu.memory_space<vmem>>, vector<1x512xf32>
    %44 = vector.broadcast %43 : vector<1x512xf32> to vector<32x512xf32>
    %45 = arith.addf %42, %44 : vector<32x512xf32>
    %cst_33 = arith.constant 5.000000e-01 : f32
    %46 = vector.broadcast %cst_33 : f32 to vector<32x512xf32>
    %47 = arith.mulf %46, %45 : vector<32x512xf32>
    %cst_34 = arith.constant 1.41421354 : f32
    %48 = vector.broadcast %cst_34 : f32 to vector<32x512xf32>
    %49 = arith.divf %45, %48 : vector<32x512xf32>
    %50 = math.erf %49 : vector<32x512xf32>
    %cst_35 = arith.constant 1.000000e+00 : f32
    %51 = vector.broadcast %cst_35 : f32 to vector<32x512xf32>
    %52 = arith.addf %51, %50 : vector<32x512xf32>
    %53 = arith.mulf %47, %52 : vector<32x512xf32>
    %c0_36 = arith.constant 0 : index
    %c0_37 = arith.constant 0 : index
    %54 = vector.load %arg12[%c0_36, %c0_37] : memref<512x128xf32, #tpu.memory_space<vmem>>, vector<512x128xf32>
    %cst_38 = arith.constant dense<0.000000e+00> : vector<32x128xf32>
    %55 = tpu.matmul %53, %54, %cst_38 {dimension_numbers = #tpu.dot_dimension_numbers<[1], [0], [0], [1], [0, 0, 1, 1], [], []>} : vector<32x512xf32>, vector<512x128xf32>, vector<32x128xf32> -> vector<32x128xf32>
    %c0_39 = arith.constant 0 : index
    %c0_40 = arith.constant 0 : index
    %56 = vector.load %arg13[%c0_39, %c0_40] : memref<1x128xf32, #tpu.memory_space<vmem>>, vector<1x128xf32>
    %57 = vector.broadcast %56 : vector<1x128xf32> to vector<32x128xf32>
    %58 = arith.addf %55, %57 : vector<32x128xf32>
    %c0_41 = arith.constant 0 : index
    %c0_42 = arith.constant 0 : index
    %59 = vector.load %arg18[%c0_41, %c0_42] : memref<32x128xf32, #tpu.memory_space<vmem>>, vector<32x128xf32>
    tpu.vector_store %arg18[%c0_41, %c0_42], %58 {strides = array<i32>} : memref<32x128xf32, #tpu.memory_space<vmem>>, vector<32x128xf32>,
    %c0_43 = arith.constant 0 : index
    %c0_44 = arith.constant 0 : index
    %60 = vector.load %arg14[%c0_43, %c0_44] : memref<64x64xf32, #tpu.memory_space<vmem>>, vector<64x64xf32>
    %cst_45 = arith.constant dense<0.000000e+00> : vector<32x64xf32>
    %61 = tpu.matmul %35, %60, %cst_45 {dimension_numbers = #tpu.dot_dimension_numbers<[1], [0], [0], [1], [0, 0, 1, 1], [], []>} : vector<32x64xf32>, vector<64x64xf32>, vector<32x64xf32> -> vector<32x64xf32>
    %c0_46 = arith.constant 0 : index
    %c0_47 = arith.constant 0 : index
    %62 = vector.load %arg15[%c0_46, %c0_47] : memref<1x64xf32, #tpu.memory_space<vmem>>, vector<1x64xf32>
    %63 = vector.broadcast %62 : vector<1x64xf32> to vector<32x64xf32>
    %64 = arith.addf %61, %63 : vector<32x64xf32>
    %cst_48 = arith.constant 5.000000e-01 : f32
    %65 = vector.broadcast %cst_48 : f32 to vector<32x64xf32>
    %66 = arith.mulf %65, %64 : vector<32x64xf32>
    %cst_49 = arith.constant 1.41421354 : f32
    %67 = vector.broadcast %cst_49 : f32 to vector<32x64xf32>
    %68 = arith.divf %64, %67 : vector<32x64xf32>
    %69 = math.erf %68 : vector<32x64xf32>
    %cst_50 = arith.constant 1.000000e+00 : f32
    %70 = vector.broadcast %cst_50 : f32 to vector<32x64xf32>
    %71 = arith.addf %70, %69 : vector<32x64xf32>
    %72 = arith.mulf %66, %71 : vector<32x64xf32>
    %c0_51 = arith.constant 0 : index
    %c0_52 = arith.constant 0 : index
    %73 = vector.load %arg16[%c0_51, %c0_52] : memref<64x64xf32, #tpu.memory_space<vmem>>, vector<64x64xf32>
    %cst_53 = arith.constant dense<0.000000e+00> : vector<32x64xf32>
    %74 = tpu.matmul %72, %73, %cst_53 {dimension_numbers = #tpu.dot_dimension_numbers<[1], [0], [0], [1], [0, 0, 1, 1], [], []>} : vector<32x64xf32>, vector<64x64xf32>, vector<32x64xf32> -> vector<32x64xf32>
    %c0_54 = arith.constant 0 : index
    %c0_55 = arith.constant 0 : index
    %75 = vector.load %arg17[%c0_54, %c0_55] : memref<1x64xf32, #tpu.memory_space<vmem>>, vector<1x64xf32>
    %76 = vector.broadcast %75 : vector<1x64xf32> to vector<32x64xf32>
    %77 = arith.addf %74, %76 : vector<32x64xf32>
    %78 = tpu.concatenate %35, %77 in 1 : vector<32x64xf32>, vector<32x64xf32> -> vector<32x128xf32>
    %c0_56 = arith.constant 0 : index
    %c0_57 = arith.constant 0 : index
    %79 = vector.load %arg19[%c0_56, %c0_57] : memref<32x128xf32, #tpu.memory_space<vmem>>, vector<32x128xf32>
    tpu.vector_store %arg19[%c0_56, %c0_57], %78 {strides = array<i32>} : memref<32x128xf32, #tpu.memory_space<vmem>>, vector<32x128xf32>,
    return
  }
  func.func @transform_0(%arg0: i32) -> (i32, i32) {
    %c0_i32 = arith.constant 0 : i32
    %c0_i32_0 = arith.constant 0 : i32
    return %arg0, %c0_i32 : i32, i32
  }
  func.func @transform_1(%arg0: i32) -> (i32, i32) {
    %c0_i32 = arith.constant 0 : i32
    %c0_i32_0 = arith.constant 0 : i32
    %c0_i32_1 = arith.constant 0 : i32
    return %c0_i32, %c0_i32_0 : i32, i32
  }
  func.func @transform_2(%arg0: i32) -> (i32, i32) {
    %c0_i32 = arith.constant 0 : i32
    %c0_i32_0 = arith.constant 0 : i32
    %c0_i32_1 = arith.constant 0 : i32
    return %c0_i32, %c0_i32_0 : i32, i32
  }
  func.func @transform_3(%arg0: i32) -> (i32, i32) {
    %c0_i32 = arith.constant 0 : i32
    %c0_i32_0 = arith.constant 0 : i32
    %c0_i32_1 = arith.constant 0 : i32
    return %c0_i32, %c0_i32_0 : i32, i32
  }
  func.func @transform_4(%arg0: i32) -> (i32, i32) {
    %c0_i32 = arith.constant 0 : i32
    %c0_i32_0 = arith.constant 0 : i32
    %c0_i32_1 = arith.constant 0 : i32
    return %c0_i32, %c0_i32_0 : i32, i32
  }
  func.func @transform_5(%arg0: i32) -> (i32, i32) {
    %c0_i32 = arith.constant 0 : i32
    %c0_i32_0 = arith.constant 0 : i32
    %c0_i32_1 = arith.constant 0 : i32
    return %c0_i32, %c0_i32_0 : i32, i32
  }
  func.func @transform_6(%arg0: i32) -> (i32, i32) {
    %c0_i32 = arith.constant 0 : i32
    %c0_i32_0 = arith.constant 0 : i32
    %c0_i32_1 = arith.constant 0 : i32
    return %c0_i32, %c0_i32_0 : i32, i32
  }
  func.func @transform_7(%arg0: i32) -> (i32, i32) {
    %c0_i32 = arith.constant 0 : i32
    %c0_i32_0 = arith.constant 0 : i32
    %c0_i32_1 = arith.constant 0 : i32
    return %c0_i32, %c0_i32_0 : i32, i32
  }
  func.func @transform_8(%arg0: i32) -> (i32, i32) {
    %c0_i32 = arith.constant 0 : i32
    %c0_i32_0 = arith.constant 0 : i32
    %c0_i32_1 = arith.constant 0 : i32
    return %c0_i32, %c0_i32_0 : i32, i32
  }
  func.func @transform_9(%arg0: i32) -> (i32, i32) {
    %c0_i32 = arith.constant 0 : i32
    %c0_i32_0 = arith.constant 0 : i32
    %c0_i32_1 = arith.constant 0 : i32
    return %c0_i32, %c0_i32_0 : i32, i32
  }
  func.func @transform_10(%arg0: i32) -> (i32, i32) {
    %c0_i32 = arith.constant 0 : i32
    %c0_i32_0 = arith.constant 0 : i32
    %c0_i32_1 = arith.constant 0 : i32
    return %c0_i32, %c0_i32_0 : i32, i32
  }
  func.func @transform_11(%arg0: i32) -> (i32, i32) {
    %c0_i32 = arith.constant 0 : i32
    %c0_i32_0 = arith.constant 0 : i32
    %c0_i32_1 = arith.constant 0 : i32
    return %c0_i32, %c0_i32_0 : i32, i32
  }
  func.func @transform_12(%arg0: i32) -> (i32, i32) {
    %c0_i32 = arith.constant 0 : i32
    %c0_i32_0 = arith.constant 0 : i32
    %c0_i32_1 = arith.constant 0 : i32
    return %c0_i32, %c0_i32_0 : i32, i32
  }
  func.func @transform_13(%arg0: i32) -> (i32, i32) {
    %c0_i32 = arith.constant 0 : i32
    %c0_i32_0 = arith.constant 0 : i32
    %c0_i32_1 = arith.constant 0 : i32
    return %c0_i32, %c0_i32_0 : i32, i32
  }
  func.func @transform_14(%arg0: i32) -> (i32, i32) {
    %c0_i32 = arith.constant 0 : i32
    %c0_i32_0 = arith.constant 0 : i32
    %c0_i32_1 = arith.constant 0 : i32
    return %c0_i32, %c0_i32_0 : i32, i32
  }
  func.func @transform_15(%arg0: i32) -> (i32, i32) {
    %c0_i32 = arith.constant 0 : i32
    %c0_i32_0 = arith.constant 0 : i32
    %c0_i32_1 = arith.constant 0 : i32
    return %c0_i32, %c0_i32_0 : i32, i32
  }
  func.func @transform_16(%arg0: i32) -> (i32, i32) {
    %c0_i32 = arith.constant 0 : i32
    %c0_i32_0 = arith.constant 0 : i32
    %c0_i32_1 = arith.constant 0 : i32
    return %c0_i32, %c0_i32_0 : i32, i32
  }
  func.func @transform_17(%arg0: i32) -> (i32, i32) {
    %c0_i32 = arith.constant 0 : i32
    %c0_i32_0 = arith.constant 0 : i32
    return %arg0, %c0_i32 : i32, i32
  }
  func.func @transform_18(%arg0: i32) -> (i32, i32) {
    %c0_i32 = arith.constant 0 : i32
    %c0_i32_0 = arith.constant 0 : i32
    return %arg0, %c0_i32 : i32, i32
  }
}

</mosaic_0001>

<bundles_post_ra>
// kernel: a_call__.1
= control target key start
LH: loop header
LB: loop body
LE: loop exit
PB: predicated region body
PF: predicated region fallthrough
CT: control target
= control target key end

     0   :  { %s3011_s0 = inlined_call_operand.vmem [shape: f32[32,32], index: 0, kind: input, shape index: {}]   ;;  %s3012_s1 = inlined_call_operand.hbm [shape: f32[32,128], index: 1, kind: input, shape index: {}]   ;;  %s3013_s2 = inlined_call_operand.vmem [shape: f32[128,128], index: 2, kind: input, shape index: {}]   ;;  %s3014_s3 = inlined_call_operand.vmem [shape: f32[1,128], index: 3, kind: input, shape index: {}]   ;;  %s3015_s4 = inlined_call_operand.vmem [shape: f32[1,128], index: 4, kind: input, shape index: {}, may-alias: {4,8}]   ;;  %s3016_s5 = inlined_call_operand.vmem [shape: f32[128,64], index: 5, kind: input, shape index: {}]   ;;  %s3017_s6 = inlined_call_operand.vmem [shape: f32[1,64], index: 6, kind: input, shape index: {}, may-alias: {6,14,16}]   ;;  %s3018_s7 = inlined_call_operand.hbm [shape: f32[64,128], index: 7, kind: input, shape index: {}]   ;;  %s3019_s8 = inlined_call_operand.vmem [shape: f32[1,128], index: 8, kind: input, shape index: {}, may-alias: {4,8}]   ;;  %s3020_s9 = inlined_call_operand.hbm [shape: f32[128,512], index: 9, kind: input, shape index: {}]   ;;  %s3021_s10 = inlined_call_operand.hbm [shape: f32[1,512], index: 10, kind: input, shape index: {}]   ;;  %s3022_s11 = inlined_call_operand.hbm [shape: f32[512,128], index: 11, kind: input, shape index: {}]   ;;  %s3023_s12 = inlined_call_operand.vmem [shape: f32[1,128], index: 12, kind: input, shape index: {}]   ;;  %s3024_s13 = inlined_call_operand.hbm [shape: f32[64,64], index: 13, kind: input, shape index: {}]   ;;  %s3025_s14 = inlined_call_operand.vmem [shape: f32[1,64], index: 14, kind: input, shape index: {}, may-alias: {6,14,16}]   ;;  %s3026_s15 = inlined_call_operand.hbm [shape: f32[64,64], index: 15, kind: input, shape index: {}]   ;;  %s3027_s16 = inlined_call_operand.vmem [shape: f32[1,64], index: 16, kind: input, shape index: {}, may-alias: {6,14,16}]   ;;  %s3028_s17 = inlined_call_operand.vmem [shape: f32[32,128], index: 17, kind: output, shape index: {0}]   ;;  %s3029_s18 = inlined_call_operand.vmem [shape: f32[32,128], index: 18, kind: output, shape index: {1}]  }
   0x1   :  { %3033 = sst [smem:[#allocation17_spill]] %s3011_s0 }
   0x2   :  { %3034 = sst [smem:[#allocation18_spill]] %s3012_s1 }
   0x3   :  { %3035 = sst [smem:[#allocation19_spill]] %s3013_s2 }
   0x4   :  { %24 = vsyncpa [#allocation3], 0 }
   0x5   :  { %25 = vsyncpa [#allocation5], 0 }
   0x6   :  { %26 = vsyncpa [#allocation8], 0 }
   0x7   :  { %27 = vsyncpa [#allocation11], 0  ;;  %s2516_s27 = smov [#allocation4]   ;;  %s2517_s29 = smov [#allocation7]  }
   0x8   :  { %s57_s28 = sshll.u32 %s2516_s27, 4  ;;  %s84_s30 = sshll.u32 %s2517_s29, 4  ;;  %s58_s28 = int_to_ptr.vmem [resolvable:$true] %s57_s28  ;;  %s85_s30 = int_to_ptr.vmem [resolvable:$true] %s84_s30 }
   0x9   :  { %s2354_s1 = scalar_lea.hbm %s3018_s7, 1024 }
   0xa   :  { %p2355_p0 = scmp.ne.s32.totalorder %s3018_s7, %s2354_s1  ;;  %p2358_p1 = scmp.lt.u32.totalorder %s2354_s1, %s3018_s7 }
   0xc   :  { %p2360_p2 = pnand %p2358_p1, %p2355_p0 }
   0xe   :  { %2363 = shalt.err (!%p2360_p2)
}
   0xf   :  { %s2364_s23 = scalar_lea.vmem %s58_s28, 1024  ;;  %p2369_p4 = scmp.lt.s32.totalorder %s58_s28, %s58_s28 }
  0x10   :  { %p2365_p3 = scmp.ne.s32.totalorder %s58_s28, %s2364_s23  ;;  %p2370_p5 = scmp.lt.s32.totalorder %s2364_s23, %s2364_s23 }
  0x12   :  { %p2371_p6 = por %p2370_p5, %p2369_p4 }
  0x14   :  { %p2372_p7 = pnand %p2371_p6, %p2365_p3 }
  0x16   :  { %2375 = shalt.err (!%p2372_p7)
}
  0x17   :  { %s2518_s24 = smov 128   ;;  %s2519_s25 = smov 8  }
  0x18   :  { %63 = dma.hbm_to_vmem [thread:$0]  %s3018_s7, 1024, %s58_s28, [#allocation5], %s2518_s24, %s2518_s24, %s2519_s25  }
  0x19   :  { %s2376_s19 = scalar_lea.hbm %s3021_s10, 64 }
  0x1a   :  { %p2377_p8 = scmp.ne.s32.totalorder %s3021_s10, %s2376_s19  ;;  %p2380_p9 = scmp.lt.u32.totalorder %s2376_s19, %s3021_s10 }
  0x1c   :  { %p2382_p10 = pnand %p2380_p9, %p2377_p8 }
  0x1e   :  { %2385 = shalt.err (!%p2382_p10)
}
  0x1f   :  { %s2386_s2 = scalar_lea.vmem %s85_s30, 64  ;;  %p2391_p12 = scmp.lt.s32.totalorder %s85_s30, %s85_s30 }
  0x20   :  { %p2387_p11 = scmp.ne.s32.totalorder %s85_s30, %s2386_s2  ;;  %p2392_p13 = scmp.lt.s32.totalorder %s2386_s2, %s2386_s2 }
  0x22   :  { %p2393_p0 = por %p2392_p13, %p2391_p12 }
  0x24   :  { %p2394_p1 = pnand %p2393_p0, %p2387_p11 }
  0x26   :  { %2397 = shalt.err (!%p2394_p1)
}
  0x27   :  { %87 = dma.hbm_to_vmem [thread:$0]  %s3021_s10, 64, %s85_s30, [#allocation8]  }
  0x28   :  { %s2520_s23 = smov [#allocation10]   ;;  %s2521_s27 = smov [#allocation2]  }
  0x29   :  { %s107_s26 = sshll.u32 %s2520_s23, 4  ;;  %s35_s29 = sshll.u32 %s2521_s27, 4  ;;  %s108_s26 = int_to_ptr.vmem [resolvable:$true] %s107_s26  ;;  %s2651_s29 = int_to_ptr.vmem [resolvable:$true] %s35_s29 }
  0x2a   :  { %s2398_s1 = scalar_lea.hbm %s3024_s13, 1024 }
  0x2b   :  { %p2399_p2 = scmp.ne.s32.totalorder %s3024_s13, %s2398_s1  ;;  %p2402_p3 = scmp.lt.u32.totalorder %s2398_s1, %s3024_s13 }
  0x2d   :  { %p2404_p4 = pnand %p2402_p3, %p2399_p2 }
  0x2f   :  { %2407 = shalt.err (!%p2404_p4)
}
  0x30   :  { %s2408_s10 = scalar_lea.vmem %s108_s26, 1024  ;;  %p2413_p6 = scmp.lt.s32.totalorder %s108_s26, %s108_s26 }
  0x31   :  { %p2409_p5 = scmp.ne.s32.totalorder %s108_s26, %s2408_s10  ;;  %p2414_p7 = scmp.lt.s32.totalorder %s2408_s10, %s2408_s10 }
  0x33   :  { %p2415_p8 = por %p2414_p7, %p2413_p6 }
  0x35   :  { %p2416_p9 = pnand %p2415_p8, %p2409_p5 }
  0x37   :  { %2419 = shalt.err (!%p2416_p9)
}
  0x38   :  { %113 = dma.hbm_to_vmem [thread:$0]  %s3024_s13, 1024, %s108_s26, [#allocation11], %s2518_s24, %s2518_s24, %s2519_s25  }
  0x39   :  { %s3036_s27 = sld [smem:[#allocation18_spill]] }
  0x3f   :  { %s2420_s0 = scalar_lea.hbm %s3036_s27, 512 }
  0x40   :  { %p2421_p10 = scmp.ne.s32.totalorder %s3036_s27, %s2420_s0  ;;  %p2424_p11 = scmp.lt.u32.totalorder %s2420_s0, %s3036_s27 }
  0x42   :  { %p2426_p12 = pnand %p2424_p11, %p2421_p10 }
  0x44   :  { %2429 = shalt.err (!%p2426_p12)
}
  0x45   :  { %s2430_s22 = scalar_lea.vmem %s2651_s29, 512  ;;  %p2435_p0 = scmp.lt.s32.totalorder %s2651_s29, %s2651_s29 }
  0x46   :  { %p2431_p13 = scmp.ne.s32.totalorder %s2651_s29, %s2430_s22  ;;  %p2436_p1 = scmp.lt.s32.totalorder %s2430_s22, %s2430_s22 }
  0x48   :  { %p2437_p2 = por %p2436_p1, %p2435_p0 }
  0x4a   :  { %p2438_p3 = pnand %p2437_p2, %p2431_p13 }
  0x4c   :  { %2441 = shalt.err (!%p2438_p3)
}
  0x4d   :  { %41 = dma.hbm_to_vmem [thread:$0]  %s3036_s27, 512, %s2651_s29, [#allocation3], %s2518_s24, %s2518_s24, %s2519_s25  }
  0x4e   :  { %s2522_s2 = smov [#allocation6]   ;;  %s2442_s28 = scalar_lea.hbm %s3020_s9, 8192 }
  0x4f   :  { %s71_s10 = sshll.u32 %s2522_s2, 4  ;;  %p2443_p4 = scmp.ne.s32.totalorder %s3020_s9, %s2442_s28  ;;  %s72_s10 = int_to_ptr.vmem [resolvable:$true] %s71_s10 }
  0x50   :  { %p2446_p5 = scmp.lt.u32.totalorder %s2442_s28, %s3020_s9 }
  0x52   :  { %p2448_p6 = pnand %p2446_p5, %p2443_p4 }
  0x54   :  { %2451 = shalt.err (!%p2448_p6)
}
  0x55   :  { %s2452_s20 = scalar_lea.vmem %s72_s10, 8192  ;;  %p2457_p8 = scmp.lt.s32.totalorder %s72_s10, %s72_s10 }
  0x56   :  { %p2453_p7 = scmp.ne.s32.totalorder %s72_s10, %s2452_s20  ;;  %p2458_p9 = scmp.lt.s32.totalorder %s2452_s20, %s2452_s20 }
  0x58   :  { %p2459_p10 = por %p2458_p9, %p2457_p8 }
  0x5a   :  { %p2460_p11 = pnand %p2459_p10, %p2453_p7 }
  0x5c   :  { %2463 = shalt.err (!%p2460_p11)
}
  0x5d   :  { %s2523_s29 = smov 512   ;;  %s2524_s27 = smov 32  }
  0x5e   :  { %77 = dma.hbm_to_vmem [thread:$0]  %s3020_s9, 8192, %s72_s10, [#allocation5], %s2523_s29, %s2523_s29, %s2524_s27  }
  0x5f   :  { %s2525_s13 = smov [#allocation9]   ;;  %s2526_s2 = smov [#allocation12]  }
  0x60   :  { %s93_s26 = sshll.u32 %s2525_s13, 4  ;;  %s121_s30 = sshll.u32 %s2526_s2, 4  ;;  %s94_s26 = int_to_ptr.vmem [resolvable:$true] %s93_s26  ;;  %s122_s30 = int_to_ptr.vmem [resolvable:$true] %s121_s30 }
  0x61   :  { %s2464_s23 = scalar_lea.hbm %s3022_s11, 8192 }
  0x62   :  { %p2465_p12 = scmp.ne.s32.totalorder %s3022_s11, %s2464_s23  ;;  %p2468_p13 = scmp.lt.u32.totalorder %s2464_s23, %s3022_s11 }
  0x64   :  { %p2470_p0 = pnand %p2468_p13, %p2465_p12 }
  0x66   :  { %2473 = shalt.err (!%p2470_p0)
}
  0x67   :  { %s2474_s9 = scalar_lea.vmem %s94_s26, 8192  ;;  %p2479_p2 = scmp.lt.s32.totalorder %s94_s26, %s94_s26 }
  0x68   :  { %p2475_p1 = scmp.ne.s32.totalorder %s94_s26, %s2474_s9  ;;  %p2480_p3 = scmp.lt.s32.totalorder %s2474_s9, %s2474_s9 }
  0x6a   :  { %p2481_p4 = por %p2480_p3, %p2479_p2 }
  0x6c   :  { %p2482_p5 = pnand %p2481_p4, %p2475_p1 }
  0x6e   :  { %2485 = shalt.err (!%p2482_p5)
}
  0x6f   :  { %99 = dma.hbm_to_vmem [thread:$0]  %s3022_s11, 8192, %s94_s26, [#allocation8], %s2518_s24, %s2518_s24, %s2519_s25  }
  0x70   :  { %s2486_s22 = scalar_lea.hbm %s3026_s15, 1024 }
  0x71   :  { %p2487_p6 = scmp.ne.s32.totalorder %s3026_s15, %s2486_s22  ;;  %p2490_p7 = scmp.lt.u32.totalorder %s2486_s22, %s3026_s15 }
  0x73   :  { %p2492_p8 = pnand %p2490_p7, %p2487_p6 }
  0x75   :  { %2495 = shalt.err (!%p2492_p8)
}
  0x76   :  { %s2496_s23 = scalar_lea.vmem %s122_s30, 1024  ;;  %p2501_p10 = scmp.lt.s32.totalorder %s122_s30, %s122_s30 }
  0x77   :  { %p2497_p9 = scmp.ne.s32.totalorder %s122_s30, %s2496_s23  ;;  %p2502_p11 = scmp.lt.s32.totalorder %s2496_s23, %s2496_s23 }
  0x79   :  { %p2503_p12 = por %p2502_p11, %p2501_p10 }
  0x7b   :  { %p2504_p13 = pnand %p2503_p12, %p2497_p9 }
  0x7d   :  { %2507 = shalt.err (!%p2504_p13)
}
  0x7e   :  { %127 = dma.hbm_to_vmem [thread:$0]  %s3026_s15, 1024, %s122_s30, [#allocation11], %s2518_s24, %s2518_s24, %s2519_s25  }
  0x7f   :  { %2508 = dma.done.wait [#allocation3], 512  }
  0x80   :  { %2509 = vsyncadd [#allocation3], 4294966784 }
  0x81   :  { %2510 = dma.done.wait [#allocation5], 9216  }
  0x82   :  { %2511 = vsyncadd [#allocation5], 4294958080 }
  0x83   :  { %2512 = dma.done.wait [#allocation8], 8256  }
  0x84   :  { %2513 = vsyncadd [#allocation8], 4294959040 }
  0x85   :  { %2514 = dma.done.wait [#allocation11], 2048  }
  0x86   :  { %2515 = vsyncadd [#allocation11], 4294965248  ;;  %vm159_vm0 = vcmask 261120   ;;  %v155_v0 = vld [vmem:[#allocation2] sm:$0xff]  ;;  %v156_v1 = vld [vmem:[#allocation2 + $0x8] sm:$0xff]  ;;  %s3037_s1 = sld [smem:[#allocation17_spill]] }
  0x87   :  { %v157_v2 = vld [vmem:[#allocation2 + $0x10] sm:$0xff]  ;;  %v2005_v3 = vpack.c.bf16 %v156_v1, %v155_v0  ;;  %v158_v4 = vld [vmem:[#allocation2 + $0x18] sm:$0xff]  ;;  %s3038_s25 = sld [smem:[#allocation19_spill]]  ;;  %v497_v34 = vld [vmem:[%s3016_s5] sm:$0xff]  ;;  %vm641_vm1 = vcmask 523264  }
  0x88   :  { %v2009_v6 = vpack.c.bf16 %v158_v4, %v157_v2  ;;  %v498_v35 = vld [vmem:[%s3016_s5 + $0x8] sm:$0xff]  ;;  %v499_v45 = vld [vmem:[%s3016_s5 + $0x10] sm:$0xff]  ;;  %v500_v46 = vld [vmem:[%s3016_s5 + $0x18] sm:$0xff] }
  0x89   :  { %2006 = vmatprep.subr.bf16.mxu0 %v2005_v3  ;;  %v2077_v36 = vpack.c.bf16 %v498_v35, %v497_v34  ;;  %v2081_v47 = vpack.c.bf16 %v500_v46, %v499_v45  ;;  %v501_v48 = vld [vmem:[%s3016_s5 + $0x20] sm:$0xff]  ;;  %v502_v49 = vld [vmem:[%s3016_s5 + $0x28] sm:$0xff]  ;;  %v503_v51 = vld [vmem:[%s3016_s5 + $0x30] sm:$0xff] }
  0x8a   :  { %2008 = vmatpush3.bf16.msra.mxu0 %v2005_v3  ;;  %v2085_v50 = vpack.c.bf16 %v502_v49, %v501_v48  ;;  %v504_v52 = vld [vmem:[%s3016_s5 + $0x38] sm:$0xff]  ;;  %v505_v54 = vld [vmem:[%s3016_s5 + $0x40] sm:$0xff]  ;;  %v506_v55 = vld [vmem:[%s3016_s5 + $0x48] sm:$0xff] }
  0x8b   :  { %2010 = vmatprep.subr.bf16.mxu0 %v2009_v6  ;;  %v2089_v53 = vpack.c.bf16 %v504_v52, %v503_v51  ;;  %v2093_v56 = vpack.c.bf16 %v506_v55, %v505_v54  ;;  %v507_v57 = vld [vmem:[%s3016_s5 + $0x50] sm:$0xff]  ;;  %v508_v58 = vld [vmem:[%s3016_s5 + $0x58] sm:$0xff]  ;;  %v509_v60 = vld [vmem:[%s3016_s5 + $0x60] sm:$0xff] }
  0x8c   :  { %v151_v5 = vld [vmem:[%s3037_s1] sm:$0xff]  ;;  %v152_v15 = vld [vmem:[%s3037_s1 + $0x8] sm:$0xff]  ;;  %v153_v16 = vld [vmem:[%s3037_s1 + $0x10] sm:$0xff]  ;;  %v2097_v59 = vpack.c.bf16 %v508_v58, %v507_v57 }
  0x8d   :  { %1819 = vmatprep.mubr.msk.f32.mxu0 %vm159_vm0, %v151_v5  ;;  %v257_v7 = vld [vmem:[%s3038_s25] sm:$0xff]  ;;  %v258_v8 = vld [vmem:[%s3038_s25 + $0x8] sm:$0xff]  ;;  %v259_v9 = vld [vmem:[%s3038_s25 + $0x10] sm:$0xff] }
  0x8e   :  { %v260_v10 = vld [vmem:[%s3038_s25 + $0x18] sm:$0xff]  ;;  %v2013_v11 = vpack.c.bf16 %v258_v8, %v257_v7  ;;  %v261_v13 = vld [vmem:[%s3038_s25 + $0x20] sm:$0xff]  ;;  %v262_v14 = vld [vmem:[%s3038_s25 + $0x28] sm:$0xff]  ;;  %2012 = vmatpush3.bf16.msra.mxu0 %v2009_v6 }
  0x8f   :  { %v2017_v12 = vpack.c.bf16 %v260_v10, %v259_v9  ;;  %v2021_v17 = vpack.c.bf16 %v262_v14, %v261_v13  ;;  %v263_v18 = vld [vmem:[%s3038_s25 + $0x30] sm:$0xff]  ;;  %v264_v19 = vld [vmem:[%s3038_s25 + $0x38] sm:$0xff]  ;;  %v265_v22 = vld [vmem:[%s3038_s25 + $0x40] sm:$0xff] }
  0x90   :  { %2014 = vmatprep.subr.bf16.mxu1 %v2013_v11  ;;  %2046 = vmatprep.subr.bf16.mxu0 %v2013_v11  ;;  %v154_v20 = vld [vmem:[%s3037_s1 + $0x18] sm:$0xff]  ;;  %v2025_v21 = vpack.c.bf16 %v264_v19, %v263_v18  ;;  %v266_v23 = vld [vmem:[%s3038_s25 + $0x48] sm:$0xff]  ;;  %v267_v25 = vld [vmem:[%s3038_s25 + $0x50] sm:$0xff] }
  0x91   :  { %2016 = vmatpush3.bf16.msra.mxu1 %v2013_v11  ;;  %1820 = vmatmul.mubr.msk.f32.vlgmr.msra.gmra.mrb[0].mxu0 %vm159_vm0, %v152_v15  ;;  %v2029_v24 = vpack.c.bf16 %v266_v23, %v265_v22  ;;  %v268_v26 = vld [vmem:[%s3038_s25 + $0x58] sm:$0xff]  ;;  %v269_v28 = vld [vmem:[%s3038_s25 + $0x60] sm:$0xff]  ;;  %v270_v29 = vld [vmem:[%s3038_s25 + $0x68] sm:$0xff] }
  0x92   :  { %2018 = vmatprep.subr.bf16.mxu1 %v2017_v12  ;;  %1822 = vmatprep.mubr.msk.f32.mxu0 %vm159_vm0, %v153_v16  ;;  %v2033_v27 = vpack.c.bf16 %v268_v26, %v267_v25  ;;  %v2037_v30 = vpack.c.bf16 %v270_v29, %v269_v28  ;;  %v271_v31 = vld [vmem:[%s3038_s25 + $0x70] sm:$0xff]  ;;  %v272_v32 = vld [vmem:[%s3038_s25 + $0x78] sm:$0xff]  ;;  %v510_v61 = vld [vmem:[%s3016_s5 + $0x68] sm:$0xff]  ;;  %s2528_s25 = smov 64  }
  0x93   :  { %2048 = vmatpush3.bf16.msra.mxu0 %v2013_v11  ;;  %v2041_v33 = vpack.c.bf16 %v272_v32, %v271_v31  ;;  %v2101_v62 = vpack.c.bf16 %v510_v61, %v509_v60  ;;  %v511_v63 = vld [vmem:[%s3016_s5 + $0x70] sm:$0xff]  ;;  %v512_v0 = vld [vmem:[%s3016_s5 + $0x78] sm:$0xff]  ;;  %v1600_v31 = vld [vmem:[%s3014_s3] ss:$0 sm:$0xff] }
  0x94   :  { %2050 = vmatprep.subr.bf16.mxu0 %v2017_v12  ;;  %v2105_v1 = vpack.c.bf16 %v512_v0, %v511_v63  ;;  %v1601_v35 = vld [vmem:[%s3015_s4] ss:$0 sm:$0xff]  ;;  %v627_v49 = vld [vmem:[#allocation4 + $0x8] sm:$0xff]  ;;  %v628_v51 = vld [vmem:[#allocation4 + $0x10] sm:$0xff] }
  0x95   :  { %2020 = vmatpush3.bf16.msra.mxu1 %v2017_v12  ;;  %1823 = vmatmul.mubr.msk.f32.gmra.mrb[2].mxu0 %vm159_vm0, %v154_v20  ;;  %v626_v48 = vld [vmem:[#allocation4] sm:$0xff]  ;;  %v629_v52 = vld [vmem:[#allocation4 + $0x18] sm:$0xff]  ;;  %v631_v55 = vld [vmem:[#allocation4 + $0x28] sm:$0xff] }
  0x96   :  { %2022 = vmatprep.subr.bf16.mxu1 %v2021_v17  ;;  %v630_v54 = vld [vmem:[#allocation4 + $0x20] sm:$0xff]  ;;  %v632_v57 = vld [vmem:[#allocation4 + $0x30] sm:$0xff]  ;;  %v633_v58 = vld [vmem:[#allocation4 + $0x38] sm:$0xff] }
  0x97   :  { %2052 = vmatpush3.bf16.msra.mxu0 %v2017_v12  ;;  %v740_v60 = vld [vmem:[#allocation6 + $0x8] sm:$0xff]  ;;  %v746_v0 = vld [vmem:[#allocation6 + $0x38] sm:$0xff] }
  0x98   :  { %2054 = vmatprep.subr.bf16.mxu0 %v2021_v17  ;;  %v744_v61 = vld [vmem:[#allocation6 + $0x28] sm:$0xff] }
  0x99   :  { %2024 = vmatpush3.bf16.msra.mxu1 %v2021_v17  ;;  %v2125_v63 = vpack.c.bf16 %v744_v61, %v740_v60  ;;  %v748_v61 = vld [vmem:[#allocation6 + $0x48] sm:$0xff] }
  0x9a   :  { %2026 = vmatprep.subr.bf16.mxu1 %v2025_v21 }
  0x9b   :  { %2056 = vmatpush3.bf16.msra.mxu0 %v2021_v17 }
  0x9c   :  { %2058 = vmatprep.subr.bf16.mxu0 %v2025_v21 }
  0x9d   :  { %2028 = vmatpush3.bf16.msra.mxu1 %v2025_v21 }
  0x9e   :  { %2030 = vmatprep.subr.bf16.mxu1 %v2029_v24 }
  0x9f   :  { %2060 = vmatpush3.bf16.msra.mxu0 %v2025_v21 }
  0xa0   :  { %2062 = vmatprep.subr.bf16.mxu0 %v2029_v24 }
  0xa1   :  { %2032 = vmatpush3.bf16.msra.mxu1 %v2029_v24 }
  0xa2   :  { %2034 = vmatprep.subr.bf16.mxu1 %v2033_v27 }
  0xa3   :  { %2064 = vmatpush3.bf16.msra.mxu0 %v2029_v24 }
  0xa4   :  { %2066 = vmatprep.subr.bf16.mxu0 %v2033_v27 }
  0xa5   :  { %2036 = vmatpush3.bf16.msra.mxu1 %v2033_v27 }
  0xa6   :  { %2038 = vmatprep.subr.bf16.mxu1 %v2037_v30 }
  0xa7   :  { %2068 = vmatpush3.bf16.msra.mxu0 %v2033_v27 }
  0xa8   :  { %2070 = vmatprep.subr.bf16.mxu0 %v2037_v30 }
  0xa9   :  { %2040 = vmatpush3.bf16.msra.mxu1 %v2037_v30 }
  0xaa   :  { %2042 = vmatprep.subr.bf16.mxu1 %v2041_v33 }
  0xab   :  { %2072 = vmatpush3.bf16.msra.mxu0 %v2037_v30 }
  0xac   :  { %2074 = vmatprep.subr.bf16.mxu0 %v2041_v33 }
  0xad   :  { %2044 = vmatpush3.bf16.msra.mxu1 %v2041_v33 }
  0xae   :  { %2078 = vmatprep.subr.bf16.mxu1 %v2077_v36 }
  0xaf   :  { %2076 = vmatpush3.bf16.msra.mxu0 %v2041_v33 }
 0x164   :  { %v2800_v37 = vpop.f32.mrb[0].mxu0 }
 0x165   :  { %v2802_v38 = vpop.f32.mrb[1].mxu0  ;;  %v359_v40 = vmul.f32 %v2800_v37, %v2800_v37 }
 0x166   :  { %v358_v39 = vmul.f32 %v2802_v38, %v2802_v38  ;;  %1857 = vmatprep.mubr.f32.mxu1 %v2802_v38 }
 0x167   :  { %1858 = vmatmul.mubr.f32.vlgmr.msra.gmra.mrb[0].mxu1 %v2800_v37 }
 0x168   :  { %v2810_v41 = vpop.f32.mrb[2].mxu0  ;;  %1895 = vmatprep.mubr.f32.mxu0 %v358_v39  ;;  %2080 = vmatpush3.bf16.msra.mxu1 %v2077_v36 }
 0x169   :  { %v361_v42 = vmul.f32 %v2810_v41, %v2810_v41  ;;  %v2814_v43 = vpop.f32.mrb[3].mxu0  ;;  %1896 = vmatmul.mubr.f32.vlgmr.msra.gmra.mrb[4].mxu0 %v359_v40  ;;  %2082 = vmatprep.subr.bf16.mxu1 %v2081_v47 }
 0x16a   :  { %v360_v44 = vmul.f32 %v2814_v43, %v2814_v43  ;;  %1860 = vmatprep.mubr.f32.mxu1 %v2814_v43 }
 0x16b   :  { %1861 = vmatmul.mubr.f32.gmra.mrb[2].mxu1 %v2810_v41 }
 0x16c   :  { %1898 = vmatprep.mubr.f32.mxu0 %v360_v44  ;;  %2084 = vmatpush3.bf16.msra.mxu1 %v2081_v47 }
 0x16d   :  { %1899 = vmatmul.mubr.f32.gmra.mrb[6].mxu0 %v361_v42  ;;  %2086 = vmatprep.subr.bf16.mxu1 %v2085_v50 }
 0x170   :  { %2088 = vmatpush3.bf16.msra.mxu1 %v2085_v50  ;;  %v2109_v50 = vpack.c.bf16 %v627_v49, %v626_v48 }
 0x171   :  { %2090 = vmatprep.subr.bf16.mxu1 %v2089_v53 }
 0x172   :  { %2110 = vmatprep.subr.bf16.mxu0 %v2109_v50 }
 0x173   :  { %2112 = vmatpush3.bf16.msra.mxu0 %v2109_v50 }
 0x174   :  { %2092 = vmatpush3.bf16.msra.mxu1 %v2089_v53  ;;  %v2113_v53 = vpack.c.bf16 %v629_v52, %v628_v51 }
 0x175   :  { %2094 = vmatprep.subr.bf16.mxu1 %v2093_v56 }
 0x176   :  { %2114 = vmatprep.subr.bf16.mxu0 %v2113_v53 }
 0x177   :  { %2116 = vmatpush3.bf16.msra.mxu0 %v2113_v53 }
 0x178   :  { %2096 = vmatpush3.bf16.msra.mxu1 %v2093_v56  ;;  %v2117_v56 = vpack.c.bf16 %v631_v55, %v630_v54 }
 0x179   :  { %2098 = vmatprep.subr.bf16.mxu1 %v2097_v59 }
 0x17a   :  { %2118 = vmatprep.subr.bf16.mxu0 %v2117_v56 }
 0x17b   :  { %2120 = vmatpush3.bf16.msra.mxu0 %v2117_v56 }
 0x17c   :  { %2100 = vmatpush3.bf16.msra.mxu1 %v2097_v59  ;;  %v2121_v59 = vpack.c.bf16 %v633_v58, %v632_v57  ;;  %v739_v57 = vld [vmem:[#allocation6] sm:$0xff] }
 0x17d   :  { %2102 = vmatprep.subr.bf16.mxu1 %v2101_v62  ;;  %v743_v58 = vld [vmem:[#allocation6 + $0x20] sm:$0xff] }
 0x17e   :  { %2122 = vmatprep.subr.bf16.mxu0 %v2121_v59 }
 0x17f   :  { %2124 = vmatpush3.bf16.msra.mxu0 %v2121_v59 }
 0x180   :  { %2104 = vmatpush3.bf16.msra.mxu1 %v2101_v62  ;;  %v742_v62 = vld [vmem:[#allocation6 + $0x18] sm:$0xff]  ;;  %2126 = vmatprep.subr.bf16.mxu0 %v2125_v63 }
 0x181   :  { %2106 = vmatprep.subr.bf16.mxu1 %v2105_v1 }
 0x184   :  { %2108 = vmatpush3.bf16.msra.mxu1 %v2105_v1  ;;  %v2157_v1 = vpack.c.bf16 %v746_v0, %v742_v62  ;;  %v752_v62 = vld [vmem:[#allocation6 + $0x68] sm:$0xff] }
 0x186   :  { %2158 = vmatprep.subr.bf16.mxu1 %v2157_v1 }
 0x23a   :  { %v1859_v2 = vpop.f32.mrb[0].mxu1 }
 0x23b   :  { %v448_v3 = vmul.f32 %v1859_v2, %v1859_v2  ;;  %v460_v4 = vsub.f32 %v2800_v37, %v1859_v2  ;;  %v339_v5 = vpop.f32.mrb[1].mxu1  ;;  %v741_v2 = vld [vmem:[#allocation6 + $0x10] sm:$0xff] }
 0x23c   :  { %v447_v6 = vmul.f32 %v339_v5, %v339_v5  ;;  %v459_v7 = vsub.f32 %v2802_v38, %v339_v5  ;;  %v1897_v8 = vpop.f32.mrb[4].mxu0  ;;  %v750_v5 = vld [vmem:[#allocation6 + $0x58] sm:$0xff] }
 0x23d   :  { %v452_v9 = vsub.f32 %v1897_v8, %v448_v3  ;;  %v428_v10 = vpop.f32.mrb[5].mxu0  ;;  %v745_v3 = vld [vmem:[#allocation6 + $0x30] sm:$0xff] }
 0x23e   :  { %v451_v11 = vsub.f32 %v428_v10, %v447_v6  ;;  %v1862_v12 = vpop.f32.mrb[2].mxu1  ;;  %v754_v6 = vld [vmem:[#allocation6 + $0x78] sm:$0xff]  ;;  %v749_v8 = vld [vmem:[#allocation6 + $0x50] sm:$0xff] }
 0x23f   :  { %v456_v13 = vmax.f32 %v452_v9, 0.0  ;;  %v450_v14 = vmul.f32 %v1862_v12, %v1862_v12  ;;  %v462_v15 = vsub.f32 %v2810_v41, %v1862_v12  ;;  %v349_v16 = vpop.f32.mrb[3].mxu1  ;;  %v753_v9 = vld [vmem:[#allocation6 + $0x70] sm:$0xff]  ;;  %v762_v12 = vld [vmem:[#allocation6 + $0xb8] sm:$0xff] }
 0x240   :  { %v455_v17 = vmax.f32 %v451_v11, 0.0  ;;  %v449_v18 = vmul.f32 %v349_v16, %v349_v16  ;;  %v461_v19 = vsub.f32 %v2814_v43, %v349_v16  ;;  %v1900_v20 = vpop.f32.mrb[6].mxu0  ;;  %v2163_v10 = vpack.c.bf16 %v753_v9, %v749_v8  ;;  %v758_v11 = vld [vmem:[#allocation6 + $0x98] sm:$0xff]  ;;  %v751_v8 = vld [vmem:[#allocation6 + $0x60] sm:$0xff] }
 0x241   :  { %v464_v21 = vadd.f32 1e-05, %v456_v13  ;;  %v454_v22 = vsub.f32 %v1900_v20, %v450_v14  ;;  %v438_v23 = vpop.f32.mrb[7].mxu0  ;;  %v2165_v13 = vpack.c.bf16 %v762_v12, %v758_v11  ;;  %v757_v14 = vld [vmem:[#allocation6 + $0x90] sm:$0xff]  ;;  %v766_v16 = vld [vmem:[#allocation6 + $0xd8] sm:$0xff]  ;;  %v756_v11 = vld [vmem:[#allocation6 + $0x88] sm:$0xff] }
 0x242   :  { %v463_v24 = vadd.f32 1e-05, %v455_v17  ;;  %v453_v25 = vsub.f32 %v438_v23, %v449_v18  ;;  %v770_v18 = vld [vmem:[#allocation6 + $0xf8] sm:$0xff]  ;;  %v765_v20 = vld [vmem:[#allocation6 + $0xd0] sm:$0xff]  ;;  %v760_v12 = vld [vmem:[#allocation6 + $0xa8] sm:$0xff] }
 0x243   :  { %2298 = vrsqrt.f32 %v464_v21  ;;  %v458_v26 = vmax.f32 %v454_v22, 0.0  ;;  %v769_v21 = vld [vmem:[#allocation6 + $0xf0] sm:$0xff]  ;;  %v774_v22 = vld [vmem:[#allocation6 + $0x118] sm:$0xff] }
 0x244   :  { %2300 = vrsqrt.f32 %v463_v24  ;;  %v457_v27 = vmax.f32 %v453_v25, 0.0  ;;  %v778_v23 = vld [vmem:[#allocation6 + $0x138] sm:$0xff]  ;;  %v2171_v24 = vpack.c.bf16 %v769_v21, %v765_v20  ;;  %v764_v20 = vld [vmem:[#allocation6 + $0xc8] sm:$0xff] }
 0x245   :  { %v466_v28 = vadd.f32 1e-05, %v458_v26  ;;  %v2173_v25 = vpack.c.bf16 %v778_v23, %v774_v22  ;;  %v773_v26 = vld [vmem:[#allocation6 + $0x110] sm:$0xff]  ;;  %v768_v21 = vld [vmem:[#allocation6 + $0xe8] sm:$0xff] }
 0x246   :  { %v465_v29 = vadd.f32 1e-05, %v457_v27  ;;  %v777_v27 = vld [vmem:[#allocation6 + $0x130] sm:$0xff]  ;;  %v2137_v23 = vpack.c.bf16 %v768_v21, %v764_v20 }
 0x247   :  { %2302 = vrsqrt.f32 %v466_v28  ;;  %v782_v28 = vld [vmem:[#allocation6 + $0x158] sm:$0xff] }
 0x248   :  { %2304 = vrsqrt.f32 %v465_v29  ;;  %v786_v29 = vld [vmem:[#allocation6 + $0x178] sm:$0xff] }
 0x24d   :  { %v2299_v30 = vpop.eup %2298 }
 0x24e   :  { %v2301_v32 = vpop.eup %2300  ;;  %v472_v33 = vmul.f32 %v2299_v30, %v460_v4  ;;  %v2159_v4 = vpack.c.bf16 %v745_v3, %v741_v2  ;;  %v2175_v30 = vpack.c.bf16 %v777_v27, %v773_v26  ;;  %v2127_v2 = vpack.c.bf16 %v743_v58, %v739_v57  ;;  %v772_v26 = vld [vmem:[#allocation6 + $0x108] sm:$0xff] }
 0x24f   :  { %v471_v34 = vmul.f32 %v2301_v32, %v459_v7  ;;  %v2161_v7 = vpack.c.bf16 %v754_v6, %v750_v5  ;;  %v781_v32 = vld [vmem:[#allocation6 + $0x150] sm:$0xff]  ;;  %v2129_v6 = vpack.c.bf16 %v752_v62, %v748_v61  ;;  %v776_v27 = vld [vmem:[#allocation6 + $0x128] sm:$0xff]  ;;  %v2527_v57 = vmov 0.0  }
 0x250   :  { %v483_v36 = vmul.f32 %v1600_v31, %v472_v33  ;;  %v785_v33 = vld [vmem:[#allocation6 + $0x170] sm:$0xff]  ;;  %v1099_v58 = vld [vmem:[#allocation9 + $0x80] sm:$0xff] }
 0x251   :  { %v2303_v37 = vpop.eup %2302  ;;  %v482_v38 = vmul.f32 %v1600_v31, %v471_v34  ;;  %v790_v34 = vld [vmem:[#allocation6 + $0x198] sm:$0xff]  ;;  %v1131_v61 = vld [vmem:[#allocation9 + $0x180] sm:$0xff]  ;;  %v1132_v62 = vld [vmem:[#allocation9 + $0x188] sm:$0xff] }
 0x252   :  { %v2305_v39 = vpop.eup %2304  ;;  %v474_v40 = vmul.f32 %v2303_v37, %v462_v15  ;;  %v494_v43 = vadd.f32 %v1601_v35, %v483_v36  ;;  %v761_v15 = vld [vmem:[#allocation6 + $0xb0] sm:$0xff]  ;;  %v2179_v36 = vpack.c.bf16 %v785_v33, %v781_v32  ;;  %v780_v32 = vld [vmem:[#allocation6 + $0x148] sm:$0xff] }
 0x253   :  { %v493_v41 = vadd.f32 %v1601_v35, %v482_v38  ;;  %v473_v42 = vmul.f32 %v2305_v39, %v461_v19  ;;  %v2167_v17 = vpack.c.bf16 %v761_v15, %v757_v14  ;;  %v2169_v19 = vpack.c.bf16 %v770_v18, %v766_v16  ;;  %v789_v38 = vld [vmem:[#allocation6 + $0x190] sm:$0xff]  ;;  %v755_v18 = vld [vmem:[#allocation6 + $0x80] sm:$0xff]  ;;  %v784_v33 = vld [vmem:[#allocation6 + $0x168] sm:$0xff] }
 0x254   :  { %v485_v44 = vmul.f32 %v1600_v31, %v474_v40  ;;  %v793_v39 = vld [vmem:[#allocation6 + $0x1b0] sm:$0xff] }
 0x255   :  { %1933 = vmatprep.mubr.f32.mxu1 %v493_v41  ;;  %v484_v45 = vmul.f32 %v1600_v31, %v473_v42  ;;  %v2177_v31 = vpack.c.bf16 %v786_v29, %v782_v28  ;;  %v2183_v40 = vpack.c.bf16 %v793_v39, %v789_v38  ;;  %v1602_v41 = vld [vmem:[%s3017_s6] ss:$0 sm:$0xff]  ;;  %v2141_v29 = vpack.c.bf16 %v776_v27, %v772_v26  ;;  %v788_v38 = vld [vmem:[#allocation6 + $0x188] sm:$0xff] }
 0x256   :  { %1934 = vmatmul.mubr.f32.vlgmr.msra.gmra.mrb[4].mxu1 %v494_v43  ;;  %v496_v47 = vadd.f32 %v1601_v35, %v485_v44  ;;  %v792_v39 = vld [vmem:[#allocation6 + $0x1a8] sm:$0xff] }
 0x257   :  { %v495_v46 = vadd.f32 %v1601_v35, %v484_v45  ;;  %2160 = vmatpush1.bf16.msra.mxu1 %v2159_v4  ;;  %v794_v35 = vld [vmem:[#allocation6 + $0x1b8] sm:$0xff]  ;;  %v1104_v26 = vld [vmem:[#allocation9 + $0xa8] sm:$0xff]  ;;  %v1135_v27 = vld [vmem:[#allocation9 + $0x1a0] sm:$0xff] }
 0x258   :  { %2162 = vmatprep.subr.bf16.mxu1 %v2161_v7  ;;  %v2181_v37 = vpack.c.bf16 %v794_v35, %v790_v34  ;;  %v747_v7 = vld [vmem:[#allocation6 + $0x40] sm:$0xff]  ;;  %v2145_v35 = vpack.c.bf16 %v784_v33, %v780_v32 }
 0x259   :  { %1936 = vmatprep.mubr.f32.mxu1 %v495_v46  ;;  %v2131_v15 = vpack.c.bf16 %v751_v8, %v747_v7  ;;  %v1101_v7 = vld [vmem:[#allocation9 + $0x90] sm:$0xff]  ;;  %v1087_v33 = vld [vmem:[#allocation9 + $0x20] sm:$0xff] }
 0x25a   :  { %1937 = vmatmul.mubr.f32.gmra.mrb[6].mxu1 %v496_v47 }
 0x25b   :  { %2164 = vmatpush1.bf16.msra.mxu1 %v2163_v10  ;;  %978 = vmatprep.mubr.f32.mxu1 %v2527_v57 }
 0x25c   :  { %2166 = vmatprep.subr.bf16.mxu1 %v2165_v13 }
 0x25f   :  { %2168 = vmatpush1.bf16.msra.mxu1 %v2167_v17  ;;  %v2133_v17 = vpack.c.bf16 %v760_v12, %v756_v11  ;;  %v1134_v11 = vld [vmem:[#allocation9 + $0x198] sm:$0xff] }
 0x260   :  { %2170 = vmatprep.subr.bf16.mxu1 %v2169_v19  ;;  %v759_v19 = vld [vmem:[#allocation6 + $0xa0] sm:$0xff] }
 0x261   :  { %v2135_v22 = vpack.c.bf16 %v759_v19, %v755_v18  ;;  %v1085_v18 = vld [vmem:[#allocation9 + $0x10] sm:$0xff]  ;;  %v1086_v19 = vld [vmem:[#allocation9 + $0x18] sm:$0xff] }
 0x263   :  { %2172 = vmatpush1.bf16.msra.mxu1 %v2171_v24  ;;  %v763_v24 = vld [vmem:[#allocation6 + $0xc0] sm:$0xff] }
 0x264   :  { %2174 = vmatprep.subr.bf16.mxu1 %v2173_v25  ;;  %v767_v25 = vld [vmem:[#allocation6 + $0xe0] sm:$0xff] }
 0x265   :  { %v2139_v28 = vpack.c.bf16 %v767_v25, %v763_v24  ;;  %v1103_v24 = vld [vmem:[#allocation9 + $0xa0] sm:$0xff] }
 0x267   :  { %2176 = vmatpush1.bf16.msra.mxu1 %v2175_v30  ;;  %v771_v30 = vld [vmem:[#allocation6 + $0x100] sm:$0xff] }
 0x268   :  { %2178 = vmatprep.subr.bf16.mxu1 %v2177_v31  ;;  %v775_v31 = vld [vmem:[#allocation6 + $0x120] sm:$0xff] }
 0x269   :  { %v2143_v34 = vpack.c.bf16 %v775_v31, %v771_v30  ;;  %v2195_v31 = vpack.c.bf16 %v1086_v19, %v1085_v18  ;;  %v1111_v19 = vld [vmem:[#allocation9 + $0xe0] sm:$0xff] }
 0x26b   :  { %2180 = vmatpush1.bf16.msra.mxu1 %v2179_v36  ;;  %v779_v36 = vld [vmem:[#allocation6 + $0x140] sm:$0xff] }
 0x26c   :  { %2182 = vmatprep.subr.bf16.mxu1 %v2181_v37  ;;  %v783_v37 = vld [vmem:[#allocation6 + $0x160] sm:$0xff] }
 0x26f   :  { %2184 = vmatpush1.bf16.msra.mxu1 %v2183_v40  ;;  %v2147_v40 = vpack.c.bf16 %v783_v37, %v779_v36  ;;  %v1119_v37 = vld [vmem:[#allocation9 + $0x120] sm:$0xff] }
 0x329   :  { %v1935_v42 = vpop.f32.mrb[4].mxu1 }
 0x32a   :  { %v592_v43 = vadd.f32 %v1935_v42, %v1602_v41  ;;  %v586_v44 = vpop.f32.mrb[5].mxu1  ;;  %v787_v42 = vld [vmem:[#allocation6 + $0x180] sm:$0xff] }
 0x32b   :  { %v587_v45 = vadd.f32 %v1602_v41, %v586_v44 }
 0x32c   :  { %v611_v46 = vmul.f32 0.70710677, %v592_v43  ;;  %v606_v63 = vmul.f32 0.5, %v592_v43  ;;  %v791_v43 = vld [vmem:[#allocation6 + $0x1a0] sm:$0xff] }
 0x32d   :  { %v610_v47 = vmul.f32 0.70710677, %v587_v45  ;;  %v1938_v48 = vpop.f32.mrb[6].mxu1  ;;  %v605_v59 = vmul.f32 0.5, %v587_v45  ;;  %v2151_v44 = vpack.c.bf16 %v791_v43, %v787_v42  ;;  %v796_v45 = vld [vmem:[#allocation6 + $0x1c8] sm:$0xff]  ;;  %v1105_v43 = vld [vmem:[#allocation9 + $0xb0] sm:$0xff] }
 0x32e   :  { %2306 = verf.f32 %v611_v46  ;;  %v602_v49 = vadd.f32 %v1938_v48, %v1602_v41  ;;  %v596_v50 = vpop.f32.mrb[7].mxu1  ;;  %v800_v46 = vld [vmem:[#allocation6 + $0x1e8] sm:$0xff] }
 0x32f   :  { %2308 = verf.f32 %v610_v47  ;;  %v597_v51 = vadd.f32 %v1602_v41, %v596_v50  ;;  %v2149_v41 = vpack.c.bf16 %v792_v39, %v788_v38  ;;  %v798_v47 = vld [vmem:[#allocation6 + $0x1d8] sm:$0xff]  ;;  %v2153_v48 = vpack.c.bf16 %v800_v46, %v796_v45  ;;  %v795_v50 = vld [vmem:[#allocation6 + $0x1c0] sm:$0xff]  ;;  %v1120_v38 = vld [vmem:[#allocation9 + $0x128] sm:$0xff] }
 0x330   :  { %v613_v52 = vmul.f32 0.70710677, %v602_v49  ;;  %v608_v13 = vmul.f32 0.5, %v602_v49  ;;  %v802_v49 = vld [vmem:[#allocation6 + $0x1f8] sm:$0xff] }
 0x331   :  { %v612_v53 = vmul.f32 0.70710677, %v597_v51  ;;  %v607_v9 = vmul.f32 0.5, %v597_v51  ;;  %v799_v51 = vld [vmem:[#allocation6 + $0x1e0] sm:$0xff]  ;;  %v1137_v45 = vld [vmem:[#allocation9 + $0x1b0] sm:$0xff] }
 0x332   :  { %2310 = verf.f32 %v613_v52  ;;  %v2185_v52 = vpack.c.bf16 %v802_v49, %v798_v47  ;;  %v1089_v47 = vld [vmem:[#allocation9 + $0x30] sm:$0xff]  ;;  %v1138_v49 = vld [vmem:[#allocation9 + $0x1b8] sm:$0xff] }
 0x333   :  { %2312 = verf.f32 %v612_v53  ;;  %v2155_v53 = vpack.c.bf16 %v799_v51, %v795_v50  ;;  %v2233_v51 = vpack.c.bf16 %v1138_v49, %v1137_v45 }
 0x334   :  { %2186 = vmatprep.subr.bf16.mxu1 %v2185_v52  ;;  %v1121_v52 = vld [vmem:[#allocation9 + $0x130] sm:$0xff] }
 0x338   :  { %v2307_v54 = vpop.eup %2306 }
 0x339   :  { %v2309_v55 = vpop.eup %2308  ;;  %v619_v56 = vadd.f32 1.0, %v2307_v54  ;;  %v797_v54 = vld [vmem:[#allocation6 + $0x1d0] sm:$0xff] }
 0x33a   :  { %v618_v60 = vadd.f32 1.0, %v2309_v55  ;;  %v801_v55 = vld [vmem:[#allocation6 + $0x1f0] sm:$0xff] }
 0x33b   :  { %v2877_v4 = vmul.f32 %v619_v56, %v606_v63  ;;  %v2187_v56 = vpack.c.bf16 %v801_v55, %v797_v54  ;;  %v2221_v63 = vpack.c.bf16 %v1132_v62, %v1131_v61  ;;  %v1107_v55 = vld [vmem:[#allocation9 + $0xc0] sm:$0xff]  ;;  %v1140_v61 = vld [vmem:[#allocation9 + $0x1c8] sm:$0xff] }
 0x33c   :  { %v2311_v0 = vpop.eup %2310  ;;  %v2875_v1 = vmul.f32 %v618_v60, %v605_v59  ;;  %v1100_v59 = vld [vmem:[#allocation9 + $0x88] sm:$0xff] }
 0x33d   :  { %v2313_v3 = vpop.eup %2312  ;;  %v621_v5 = vadd.f32 1.0, %v2311_v0  ;;  %2188 = vmatpush1.bf16.msra.mxu1 %v2187_v56  ;;  %v2189_v60 = vpack.c.bf16 %v1100_v59, %v1099_v58  ;;  %v1603_v0 = vld [vmem:[%s3019_s8] ss:$0 sm:$0xff]  ;;  %v1108_v56 = vld [vmem:[#allocation9 + $0xc8] sm:$0xff]  ;;  %v1091_v59 = vld [vmem:[#allocation9 + $0x40] sm:$0xff] }
 0x33e   :  { %v620_v10 = vadd.f32 1.0, %v2313_v3  ;;  %1955 = vmatprep.mubr.msk.f32.mxu0 %vm641_vm1, %v2875_v1  ;;  %2222 = vmatprep.subr.bf16.mxu1 %v2221_v63  ;;  %v1084_v3 = vld [vmem:[#allocation9 + $0x8] sm:$0xff]  ;;  %v2205_v58 = vpack.c.bf16 %v1108_v56, %v1107_v55 }
 0x33f   :  { %1956 = vmatmul.mubr.msk.f32.vlgmr.msra.gmra.mrb[8].mxu0 %vm641_vm1, %v2877_v4  ;;  %v2885_v16 = vmul.f32 %v621_v5, %v608_v13  ;;  %v1115_v5 = vld [vmem:[#allocation9 + $0x100] sm:$0xff] }
 0x340   :  { %v2883_v14 = vmul.f32 %v620_v10, %v607_v9  ;;  %2128 = vmatpush1.bf16.msra.mxu0 %v2127_v2  ;;  %v1083_v2 = vld [vmem:[#allocation9] sm:$0xff]  ;;  %v1102_v9 = vld [vmem:[#allocation9 + $0x98] sm:$0xff]  ;;  %v1133_v10 = vld [vmem:[#allocation9 + $0x190] sm:$0xff] }
 0x341   :  { %2130 = vmatprep.subr.bf16.mxu0 %v2129_v6  ;;  %v1116_v6 = vld [vmem:[#allocation9 + $0x108] sm:$0xff]  ;;  %v2193_v20 = vpack.c.bf16 %v1102_v9, %v1101_v7  ;;  %v2225_v21 = vpack.c.bf16 %v1134_v11, %v1133_v10  ;;  %v1141_v7 = vld [vmem:[#allocation9 + $0x1d0] sm:$0xff]  ;;  %v1094_v10 = vld [vmem:[#allocation9 + $0x58] sm:$0xff] }
 0x342   :  { %1958 = vmatprep.mubr.msk.f32.mxu0 %vm641_vm1, %v2883_v14  ;;  %v1093_v9 = vld [vmem:[#allocation9 + $0x50] sm:$0xff]  ;;  %v1142_v11 = vld [vmem:[#allocation9 + $0x1d8] sm:$0xff] }
 0x343   :  { %1959 = vmatmul.mubr.msk.f32.gmra.mrb[10].mxu0 %vm641_vm1, %v2885_v16 }
 0x344   :  { %2132 = vmatpush1.bf16.msra.mxu0 %v2131_v15  ;;  %889 = vmatprep.mubr.f32.mxu0 %v2527_v57  ;;  %v2191_v15 = vpack.c.bf16 %v1084_v3, %v1083_v2  ;;  %v1124_v2 = vld [vmem:[#allocation9 + $0x148] sm:$0xff] }
 0x345   :  { %2134 = vmatprep.subr.bf16.mxu0 %v2133_v17  ;;  %v2223_v17 = vpack.c.bf16 %v1116_v6, %v1115_v5  ;;  %v1109_v5 = vld [vmem:[#allocation9 + $0xd0] sm:$0xff]  ;;  %v1110_v6 = vld [vmem:[#allocation9 + $0xd8] sm:$0xff] }
 0x348   :  { %2136 = vmatpush1.bf16.msra.mxu0 %v2135_v22  ;;  %v1117_v22 = vld [vmem:[#allocation9 + $0x110] sm:$0xff] }
 0x349   :  { %2138 = vmatprep.subr.bf16.mxu0 %v2137_v23  ;;  %v1118_v23 = vld [vmem:[#allocation9 + $0x118] sm:$0xff] }
 0x34a   :  { %v2227_v32 = vpack.c.bf16 %v1118_v23, %v1117_v22  ;;  %v1095_v23 = vld [vmem:[#allocation9 + $0x60] sm:$0xff] }
 0x34c   :  { %2140 = vmatpush1.bf16.msra.mxu0 %v2139_v28  ;;  %v1136_v28 = vld [vmem:[#allocation9 + $0x1a8] sm:$0xff] }
 0x34d   :  { %2142 = vmatprep.subr.bf16.mxu0 %v2141_v29  ;;  %v2229_v36 = vpack.c.bf16 %v1136_v28, %v1135_v27  ;;  %v1127_v28 = vld [vmem:[#allocation9 + $0x160] sm:$0xff] }
 0x350   :  { %2144 = vmatpush1.bf16.msra.mxu0 %v2143_v34  ;;  %v2197_v34 = vpack.c.bf16 %v1104_v26, %v1103_v24  ;;  %v1096_v24 = vld [vmem:[#allocation9 + $0x68] sm:$0xff] }
 0x351   :  { %2146 = vmatprep.subr.bf16.mxu0 %v2145_v35  ;;  %v1088_v35 = vld [vmem:[#allocation9 + $0x28] sm:$0xff]  ;;  %v2215_v26 = vpack.c.bf16 %v1096_v24, %v1095_v23 }
 0x354   :  { %2148 = vmatpush1.bf16.msra.mxu0 %v2147_v40  ;;  %v2199_v40 = vpack.c.bf16 %v1088_v35, %v1087_v33  ;;  %v1145_v33 = vld [vmem:[#allocation9 + $0x1f0] sm:$0xff] }
 0x355   :  { %2150 = vmatprep.subr.bf16.mxu0 %v2149_v41  ;;  %v2231_v41 = vpack.c.bf16 %v1120_v38, %v1119_v37  ;;  %v1097_v35 = vld [vmem:[#allocation9 + $0x70] sm:$0xff]  ;;  %v1146_v37 = vld [vmem:[#allocation9 + $0x1f8] sm:$0xff] }
 0x358   :  { %2152 = vmatpush1.bf16.msra.mxu0 %v2151_v44  ;;  %v1106_v44 = vld [vmem:[#allocation9 + $0xb8] sm:$0xff] }
 0x359   :  { %2154 = vmatprep.subr.bf16.mxu0 %v2153_v48  ;;  %v2201_v46 = vpack.c.bf16 %v1106_v44, %v1105_v43  ;;  %v1090_v48 = vld [vmem:[#allocation9 + $0x38] sm:$0xff]  ;;  %v1328_v43 = vld [vmem:[#allocation10] sm:$0xff]  ;;  %v1329_v44 = vld [vmem:[#allocation10 + $0x8] sm:$0xff] }
 0x35a   :  { %v2203_v50 = vpack.c.bf16 %v1090_v48, %v1089_v47  ;;  %v2902_v45 = vpack.c.bf16 %v1329_v44, %v1328_v43 }
 0x35c   :  { %2156 = vmatpush1.bf16.msra.mxu0 %v2155_v53  ;;  %v1122_v53 = vld [vmem:[#allocation9 + $0x138] sm:$0xff] }
 0x35d   :  { %2190 = vmatprep.subr.bf16.mxu0 %v2189_v60  ;;  %v2235_v54 = vpack.c.bf16 %v1122_v53, %v1121_v52  ;;  %v1092_v60 = vld [vmem:[#allocation9 + $0x48] sm:$0xff] }
 0x35e   :  { %v2207_v62 = vpack.c.bf16 %v1092_v60, %v1091_v59 }
 0x412   :  { %v1957_v8 = vpop.f32.mrb[8].mxu0 }
 0x413   :  { %v720_v12 = vpop.f32.mrb[9].mxu0  ;;  %v726_v30 = vadd.f32 %v1957_v8, %v1603_v0  ;;  %v2209_v8 = vpack.c.bf16 %v1110_v6, %v1109_v5 }
 0x414   :  { %v721_v13 = vadd.f32 %v1603_v0, %v720_v12  ;;  %v2211_v12 = vpack.c.bf16 %v1094_v10, %v1093_v9 }
 0x416   :  { %v1960_v25 = vpop.f32.mrb[10].mxu0  ;;  %890 = vmatmul.mubr.f32.vlgmr.msra.gmra.mrb[12].mxu0 %v721_v13  ;;  %979 = vmatmul.mubr.f32.vlgmr.msra.gmra.mrb[8].mxu1 %v721_v13  ;;  %v2241_v13 = vpack.c.bf16 %v1142_v11, %v1141_v7 }
 0x417   :  { %v730_v29 = vpop.f32.mrb[11].mxu0  ;;  %895 = vmatprep.mubr.f32.mxu0 %v2527_v57  ;;  %984 = vmatprep.mubr.f32.mxu1 %v2527_v57  ;;  %v736_v42 = vadd.f32 %v1960_v25, %v1603_v0  ;;  %v1144_v25 = vld [vmem:[#allocation9 + $0x1e8] sm:$0xff] }
 0x418   :  { %2192 = vmatpush3.bf16.msra.mxu0 %v2191_v15  ;;  %2224 = vmatpush3.bf16.msra.mxu1 %v2223_v17  ;;  %v731_v39 = vadd.f32 %v1603_v0, %v730_v29  ;;  %v1123_v0 = vld [vmem:[#allocation9 + $0x140] sm:$0xff]  ;;  %v1125_v15 = vld [vmem:[#allocation9 + $0x150] sm:$0xff]  ;;  %v1126_v17 = vld [vmem:[#allocation9 + $0x158] sm:$0xff] }
 0x419   :  { %2194 = vmatprep.subr.bf16.mxu0 %v2193_v20  ;;  %2226 = vmatprep.subr.bf16.mxu1 %v2225_v21  ;;  %v2239_v3 = vpack.c.bf16 %v1124_v2, %v1123_v0  ;;  %v2243_v18 = vpack.c.bf16 %v1126_v17, %v1125_v15  ;;  %v1112_v20 = vld [vmem:[#allocation9 + $0xe8] sm:$0xff]  ;;  %v1143_v21 = vld [vmem:[#allocation9 + $0x1e0] sm:$0xff] }
 0x41a   :  { %896 = vmatmul.mubr.f32.gmra.mrb[14].mxu0 %v726_v30  ;;  %985 = vmatmul.mubr.f32.gmra.mrb[10].mxu1 %v726_v30  ;;  %v2213_v22 = vpack.c.bf16 %v1112_v20, %v1111_v19  ;;  %v2245_v27 = vpack.c.bf16 %v1144_v25, %v1143_v21  ;;  %v1128_v29 = vld [vmem:[#allocation9 + $0x168] sm:$0xff] }
 0x41b   :  { %901 = vmatprep.mubr.f32.mxu0 %v2527_v57  ;;  %990 = vmatprep.mubr.f32.mxu1 %v2527_v57  ;;  %v2247_v30 = vpack.c.bf16 %v1128_v29, %v1127_v28 }
 0x41c   :  { %2196 = vmatpush3.bf16.msra.mxu0 %v2195_v31  ;;  %2228 = vmatpush3.bf16.msra.mxu1 %v2227_v32  ;;  %v1113_v31 = vld [vmem:[#allocation9 + $0xf0] sm:$0xff]  ;;  %v1114_v32 = vld [vmem:[#allocation9 + $0xf8] sm:$0xff] }
 0x41d   :  { %2198 = vmatprep.subr.bf16.mxu0 %v2197_v34  ;;  %2230 = vmatprep.subr.bf16.mxu1 %v2229_v36  ;;  %v2217_v34 = vpack.c.bf16 %v1114_v32, %v1113_v31  ;;  %v1098_v36 = vld [vmem:[#allocation9 + $0x78] sm:$0xff] }
 0x41e   :  { %902 = vmatmul.mubr.f32.gmra.mrb[16].mxu0 %v731_v39  ;;  %991 = vmatmul.mubr.f32.gmra.mrb[12].mxu1 %v731_v39  ;;  %v2219_v38 = vpack.c.bf16 %v1098_v36, %v1097_v35  ;;  %v2249_v39 = vpack.c.bf16 %v1146_v37, %v1145_v33 }
 0x41f   :  { %907 = vmatprep.mubr.f32.mxu0 %v2527_v57  ;;  %996 = vmatprep.mubr.f32.mxu1 %v2527_v57  ;;  %v1139_v57 = vld [vmem:[#allocation9 + $0x1c0] sm:$0xff] }
 0x420   :  { %2200 = vmatpush3.bf16.msra.mxu0 %v2199_v40  ;;  %2232 = vmatpush3.bf16.msra.mxu1 %v2231_v41  ;;  %v2237_v63 = vpack.c.bf16 %v1140_v61, %v1139_v57  ;;  %v1129_v40 = vld [vmem:[#allocation9 + $0x170] sm:$0xff]  ;;  %v1130_v41 = vld [vmem:[#allocation9 + $0x178] sm:$0xff] }
 0x421   :  { %2202 = vmatprep.subr.bf16.mxu0 %v2201_v46  ;;  %2234 = vmatprep.subr.bf16.mxu1 %v2233_v51  ;;  %v805_v46 = vlaneseq }
 0x422   :  { %908 = vmatmul.mubr.f32.gmra.mrb[18].mxu0 %v736_v42  ;;  %997 = vmatmul.mubr.f32.gmra.mrb[14].mxu1 %v736_v42  ;;  %v2251_v42 = vpack.c.bf16 %v1130_v41, %v1129_v40 }
 0x423   :  { %v806_v47 = vshrl.u32 %v805_v46, 7 }
 0x424   :  { %2204 = vmatpush3.bf16.msra.mxu0 %v2203_v50  ;;  %2236 = vmatpush3.bf16.msra.mxu1 %v2235_v54  ;;  %v803_v50 = vld [vmem:[#allocation7] sm:$0xf] }
 0x425   :  { %2206 = vmatprep.subr.bf16.mxu0 %v2205_v58  ;;  %2238 = vmatprep.subr.bf16.mxu1 %v2237_v63  ;;  %v807_v48 = vsub.s32 0, %v806_v47  ;;  %v815_v49 = vsub.s32 2, %v806_v47  ;;  %v811_v51 = vsub.s32 1, %v806_v47  ;;  %v819_v52 = vsub.s32 3, %v806_v47 }
 0x427   :  { %v808_v53 = vrot.slane %v803_v50, %v807_v48  ;;  %v816_v54 = vrot.slane %v803_v50, %v815_v49  ;;  %v812_v55 = vrot.slane %v803_v50, %v811_v51  ;;  %v820_v56 = vrot.slane %v803_v50, %v819_v52 }
 0x428   :  { %2208 = vmatpush3.bf16.msra.mxu0 %v2207_v62  ;;  %2240 = vmatpush3.bf16.msra.mxu1 %v2239_v3 }
 0x429   :  { %2210 = vmatprep.subr.bf16.mxu0 %v2209_v8  ;;  %2242 = vmatprep.subr.bf16.mxu1 %v2241_v13 }
 0x42c   :  { %2212 = vmatpush3.bf16.msra.mxu0 %v2211_v12  ;;  %2244 = vmatpush3.bf16.msra.mxu1 %v2243_v18 }
 0x42d   :  { %2214 = vmatprep.subr.bf16.mxu0 %v2213_v22  ;;  %2246 = vmatprep.subr.bf16.mxu1 %v2245_v27 }
 0x430   :  { %2216 = vmatpush3.bf16.msra.mxu0 %v2215_v26  ;;  %2248 = vmatpush3.bf16.msra.mxu1 %v2247_v30 }
 0x431   :  { %2218 = vmatprep.subr.bf16.mxu0 %v2217_v34  ;;  %2250 = vmatprep.subr.bf16.mxu1 %v2249_v39 }
 0x434   :  { %2220 = vmatpush3.bf16.msra.mxu0 %v2219_v38  ;;  %2252 = vmatpush3.bf16.msra.mxu1 %v2251_v42 }
 0x435   :  { %2254 = vmatprep.subr.bf16.mxu0 %v2902_v45 }
 0x4e9   :  { %v891_v57 = vpop.f32.mrb[12].mxu0  ;;  %v980_v58 = vpop.f32.mrb[8].mxu1 }
 0x4ea   :  { %v892_v59 = vadd.f32 %v891_v57, %v808_v53  ;;  %v2905_v60 = vadd.f32 %v980_v58, %v816_v54  ;;  %v893_v61 = vpop.f32.mrb[13].mxu0  ;;  %v982_v62 = vpop.f32.mrb[9].mxu1 }
 0x4eb   :  { %v894_v63 = vadd.f32 %v893_v61, %v812_v55  ;;  %v983_v0 = vadd.f32 %v982_v62, %v820_v56 }
 0x4ec   :  { %v1019_v2 = vmul.f32 0.70710677, %v892_v59  ;;  %v1021_v3 = vmul.f32 0.70710677, %v2905_v60  ;;  %v1003_v46 = vmul.f32 0.5, %v892_v59  ;;  %v1005_v61 = vmul.f32 0.5, %v2905_v60 }
 0x4ed   :  { %v1020_v5 = vmul.f32 0.70710677, %v894_v63  ;;  %v1022_v6 = vmul.f32 0.70710677, %v983_v0  ;;  %v897_v7 = vpop.f32.mrb[14].mxu0  ;;  %v986_v8 = vpop.f32.mrb[10].mxu1 }
 0x4ee   :  { %2314 = verf.f32 %v1019_v2  ;;  %v2908_v9 = vadd.f32 %v897_v7, %v808_v53  ;;  %v2910_v10 = vadd.f32 %v986_v8, %v816_v54  ;;  %v899_v11 = vpop.f32.mrb[15].mxu0  ;;  %v988_v12 = vpop.f32.mrb[11].mxu1  ;;  %v1004_v51 = vmul.f32 0.5, %v894_v63  ;;  %v1332_v60 = vld [vmem:[#allocation10 + $0x20] sm:$0xff] }
 0x4ef   :  { %2316 = verf.f32 %v1021_v3  ;;  %v2912_v13 = vadd.f32 %v899_v11, %v812_v55  ;;  %v2914_v15 = vadd.f32 %v988_v12, %v820_v56 }
 0x4f0   :  { %2318 = verf.f32 %v1020_v5  ;;  %v1023_v17 = vmul.f32 0.70710677, %v2908_v9  ;;  %v1025_v20 = vmul.f32 0.70710677, %v2910_v10 }
 0x4f1   :  { %2320 = verf.f32 %v1022_v6  ;;  %v903_v18 = vpop.f32.mrb[16].mxu0  ;;  %v992_v19 = vpop.f32.mrb[12].mxu1  ;;  %v1024_v21 = vmul.f32 0.70710677, %v2912_v13  ;;  %v1026_v22 = vmul.f32 0.70710677, %v2914_v15 }
 0x4f2   :  { %2322 = verf.f32 %v1023_v17  ;;  %v2920_v23 = vadd.f32 %v903_v18, %v808_v53  ;;  %v2922_v24 = vadd.f32 %v992_v19, %v816_v54  ;;  %v905_v25 = vpop.f32.mrb[17].mxu0  ;;  %v994_v26 = vpop.f32.mrb[13].mxu1  ;;  %v1008_v12 = vmul.f32 0.5, %v2912_v13  ;;  %v1333_v18 = vld [vmem:[#allocation10 + $0x28] sm:$0xff] }
 0x4f3   :  { %2324 = verf.f32 %v1025_v20  ;;  %v2924_v27 = vadd.f32 %v905_v25, %v812_v55  ;;  %v2926_v28 = vadd.f32 %v994_v26, %v820_v56  ;;  %v1007_v20 = vmul.f32 0.5, %v2908_v9 }
 0x4f4   :  { %2326 = verf.f32 %v1024_v21  ;;  %v1027_v29 = vmul.f32 0.70710677, %v2920_v23  ;;  %v1029_v32 = vmul.f32 0.70710677, %v2922_v24  ;;  %v1010_v21 = vmul.f32 0.5, %v2914_v15 }
 0x4f5   :  { %v909_v30 = vpop.f32.mrb[18].mxu0  ;;  %v998_v31 = vpop.f32.mrb[14].mxu1  ;;  %2328 = verf.f32 %v1026_v22  ;;  %v1028_v33 = vmul.f32 0.70710677, %v2924_v27  ;;  %v1030_v35 = vmul.f32 0.70710677, %v2926_v28 }
 0x4f6   :  { %v911_v34 = vpop.f32.mrb[19].mxu0  ;;  %2330 = verf.f32 %v1027_v29  ;;  %v2932_v36 = vadd.f32 %v909_v30, %v808_v53  ;;  %v1000_v37 = vpop.f32.mrb[15].mxu1  ;;  %v2934_v39 = vadd.f32 %v998_v31, %v816_v54  ;;  %v1330_v53 = vld [vmem:[#allocation10 + $0x10] sm:$0xff]  ;;  %v1331_v54 = vld [vmem:[#allocation10 + $0x18] sm:$0xff]  ;;  %v1009_v26 = vmul.f32 0.5, %v2910_v10 }
 0x4f7   :  { %2332 = verf.f32 %v1029_v32  ;;  %v2936_v40 = vadd.f32 %v911_v34, %v812_v55  ;;  %v2939_v43 = vadd.f32 %v1000_v37, %v820_v56  ;;  %v1006_v55 = vmul.f32 0.5, %v983_v0 }
 0x4f8   :  { %v2315_v38 = vpop.eup %2314  ;;  %2334 = verf.f32 %v1028_v33  ;;  %v1031_v42 = vmul.f32 0.70710677, %v2932_v36  ;;  %v1033_v48 = vmul.f32 0.70710677, %v2934_v39  ;;  %v2257_v63 = vpack.c.bf16 %v1331_v54, %v1330_v53 }
 0x4f9   :  { %v2317_v41 = vpop.eup %2316  ;;  %v1051_v47 = vadd.f32 1.0, %v2315_v38  ;;  %2336 = verf.f32 %v1030_v35  ;;  %v1032_v58 = vmul.f32 0.70710677, %v2936_v40  ;;  %v1034_v59 = vmul.f32 0.70710677, %v2939_v43  ;;  %v1334_v38 = vld [vmem:[#allocation10 + $0x30] sm:$0xff] }
 0x4fa   :  { %v2319_v44 = vpop.eup %2318  ;;  %v1053_v50 = vadd.f32 1.0, %v2317_v41  ;;  %2338 = verf.f32 %v1031_v42  ;;  %v2261_v33 = vpack.c.bf16 %v1333_v18, %v1332_v60  ;;  %v1012_v9 = vmul.f32 0.5, %v2924_v27  ;;  %v1335_v41 = vld [vmem:[#allocation10 + $0x38] sm:$0xff] }
 0x4fb   :  { %v2321_v49 = vpop.eup %2320  ;;  %v1052_v52 = vadd.f32 1.0, %v2319_v44  ;;  %2340 = verf.f32 %v1033_v48  ;;  %v1067_v3 = vmul.f32 %v1051_v47, %v1003_v46  ;;  %v1011_v42 = vmul.f32 0.5, %v2920_v23  ;;  %v1608_v60 = vld [vmem:[%s3023_s12] ss:$0 sm:$0xff] }
 0x4fc   :  { %v1054_v57 = vadd.f32 1.0, %v2321_v49  ;;  %v2323_v56 = vpop.eup %2322  ;;  %2342 = verf.f32 %v1032_v58  ;;  %v1069_v7 = vmul.f32 %v1053_v50, %v1005_v61  ;;  %v1014_v10 = vmul.f32 0.5, %v2926_v28 }
 0x4fd   :  { %v1068_v62 = vmul.f32 %v1052_v52, %v1004_v51  ;;  %v2325_v2 = vpop.eup %2324  ;;  %v1055_v8 = vadd.f32 1.0, %v2323_v56  ;;  %2344 = verf.f32 %v1034_v59  ;;  %v1013_v47 = vmul.f32 0.5, %v2922_v24 }
 0x4fe   :  { %v1070_v5 = vmul.f32 %v1054_v57, %v1006_v55  ;;  %v2327_v6 = vpop.eup %2326  ;;  %v1057_v11 = vadd.f32 1.0, %v2325_v2  ;;  %v2265_v50 = vpack.c.bf16 %v1335_v41, %v1334_v38  ;;  %v1016_v28 = vmul.f32 0.5, %v2936_v40 }
 0x4ff   :  { %1218 = vmatprep.mubr.f32.mxu0 %v1068_v62  ;;  %v2329_v0 = vpop.eup %2328  ;;  %v1056_v17 = vadd.f32 1.0, %v2327_v6  ;;  %v1071_v32 = vmul.f32 %v1055_v8, %v1007_v20  ;;  %v1015_v24 = vmul.f32 0.5, %v2932_v36  ;;  %v1018_v57 = vmul.f32 0.5, %v2939_v43  ;;  %v1448_v36 = vld [vmem:[#allocation12] sm:$0xff]  ;;  %v1450_v43 = vld [vmem:[#allocation12 + $0x10] sm:$0xff]  ;;  %v1453_v6 = vld [vmem:[#allocation12 + $0x28] sm:$0xff] }
 0x500   :  { %1303 = vmatprep.mubr.f32.mxu1 %v1070_v5  ;;  %1219 = vmatmul.mubr.f32.vlgmr.msra.gmra.mrb[20].mxu0 %v1067_v3  ;;  %v2331_v19 = vpop.eup %2330  ;;  %v1058_v22 = vadd.f32 1.0, %v2329_v0  ;;  %v1073_v15 = vmul.f32 %v1057_v11, %v1009_v26  ;;  %v1017_v56 = vmul.f32 0.5, %v2934_v39  ;;  %v1449_v39 = vld [vmem:[#allocation12 + $0x8] sm:$0xff]  ;;  %v1451_v3 = vld [vmem:[#allocation12 + $0x18] sm:$0xff]  ;;  %v1454_v8 = vld [vmem:[#allocation12 + $0x30] sm:$0xff] }
 0x501   :  { %1304 = vmatmul.mubr.f32.vlgmr.msra.gmra.mrb[16].mxu1 %v1069_v7  ;;  %2256 = vmatpush3.bf16.msra.mxu0 %v2902_v45  ;;  %v2333_v25 = vpop.eup %2332  ;;  %v1072_v29 = vmul.f32 %v1056_v17, %v1008_v12  ;;  %v1059_v30 = vadd.f32 1.0, %v2331_v19  ;;  %v2269_v40 = vpack.c.bf16 %v1449_v39, %v1448_v36  ;;  %v2273_v5 = vpack.c.bf16 %v1451_v3, %v1450_v43  ;;  %v1455_v0 = vld [vmem:[#allocation12 + $0x38] sm:$0xff] }
 0x502   :  { %2258 = vmatprep.subr.bf16.mxu0 %v2257_v63  ;;  %v2335_v13 = vpop.eup %2334  ;;  %v1074_v31 = vmul.f32 %v1058_v22, %v1010_v21  ;;  %v1061_v35 = vadd.f32 1.0, %v2333_v25  ;;  %v2281_v11 = vpack.c.bf16 %v1455_v0, %v1454_v8 }
 0x503   :  { %v2337_v34 = vpop.eup %2336  ;;  %v1060_v37 = vadd.f32 1.0, %v2335_v13  ;;  %1223 = vmatprep.mubr.f32.mxu0 %v1072_v29  ;;  %v1075_v49 = vmul.f32 %v1059_v30, %v1011_v42  ;;  %2270 = vmatprep.subr.bf16.mxu1 %v2269_v40 }
 0x504   :  { %v2339_v45 = vpop.eup %2338  ;;  %v1062_v44 = vadd.f32 1.0, %v2337_v34  ;;  %1308 = vmatprep.mubr.f32.mxu1 %v1074_v31  ;;  %1224 = vmatmul.mubr.f32.gmra.mrb[22].mxu0 %v1071_v32  ;;  %v1077_v53 = vmul.f32 %v1061_v35, %v1013_v47 }
 0x505   :  { %v2341_v46 = vpop.eup %2340  ;;  %1309 = vmatmul.mubr.f32.gmra.mrb[18].mxu1 %v1073_v15  ;;  %2260 = vmatpush3.bf16.msra.mxu0 %v2257_v63  ;;  %v1076_v48 = vmul.f32 %v1060_v37, %v1012_v9  ;;  %v1063_v52 = vadd.f32 1.0, %v2339_v45  ;;  %v1452_v63 = vld [vmem:[#allocation12 + $0x20] sm:$0xff] }
 0x506   :  { %v1078_v27 = vmul.f32 %v1062_v44, %v1014_v10  ;;  %2262 = vmatprep.subr.bf16.mxu0 %v2261_v33  ;;  %v2343_v51 = vpop.eup %2342  ;;  %v1065_v54 = vadd.f32 1.0, %v2341_v46  ;;  %2272 = vmatpush3.bf16.msra.mxu1 %v2269_v40  ;;  %v2277_v7 = vpack.c.bf16 %v1453_v6, %v1452_v63 }
 0x507   :  { %1228 = vmatprep.mubr.f32.mxu0 %v1076_v48  ;;  %v2345_v23 = vpop.eup %2344  ;;  %v1064_v55 = vadd.f32 1.0, %v2343_v51  ;;  %v1079_v62 = vmul.f32 %v1063_v52, %v1015_v24  ;;  %2274 = vmatprep.subr.bf16.mxu1 %v2273_v5 }
 0x508   :  { %1313 = vmatprep.mubr.f32.mxu1 %v1078_v27  ;;  %1229 = vmatmul.mubr.f32.gmra.mrb[24].mxu0 %v1075_v49  ;;  %v1066_v58 = vadd.f32 1.0, %v2345_v23  ;;  %v1081_v2 = vmul.f32 %v1065_v54, %v1017_v56  ;;  %v1609_v27 = vld [vmem:[%s3025_s14] ss:$0 sm:$0xff] }
 0x509   :  { %1314 = vmatmul.mubr.f32.gmra.mrb[20].mxu1 %v1077_v53  ;;  %2264 = vmatpush3.bf16.msra.mxu0 %v2261_v33  ;;  %v1080_v61 = vmul.f32 %v1064_v55, %v1016_v28 }
 0x50a   :  { %2266 = vmatprep.subr.bf16.mxu0 %v2265_v50  ;;  %v1082_v59 = vmul.f32 %v1066_v58, %v1018_v57  ;;  %2276 = vmatpush3.bf16.msra.mxu1 %v2273_v5 }
 0x50b   :  { %1233 = vmatprep.mubr.f32.mxu0 %v1080_v61  ;;  %2278 = vmatprep.subr.bf16.mxu1 %v2277_v7 }
 0x50c   :  { %1318 = vmatprep.mubr.f32.mxu1 %v1082_v59  ;;  %1234 = vmatmul.mubr.f32.gmra.mrb[26].mxu0 %v1079_v62 }
 0x50d   :  { %1319 = vmatmul.mubr.f32.gmra.mrb[22].mxu1 %v1081_v2  ;;  %2268 = vmatpush3.bf16.msra.mxu0 %v2265_v50 }
 0x50e   :  { %1977 = vmatprep.mubr.msk.f32.mxu0 %vm641_vm1, %v2875_v1  ;;  %2280 = vmatpush3.bf16.msra.mxu1 %v2277_v7 }
 0x50f   :  { %2282 = vmatprep.subr.bf16.mxu1 %v2281_v11 }
 0x510   :  { %1978 = vmatmul.mubr.msk.f32.vlgmr.msra.gmra.mrb[28].mxu0 %vm641_vm1, %v2877_v4 }
 0x511   :  { %1980 = vmatprep.mubr.msk.f32.mxu0 %vm641_vm1, %v2883_v14 }
 0x512   :  { %2284 = vmatpush3.bf16.msra.mxu1 %v2281_v11 }
 0x514   :  { %1981 = vmatmul.mubr.msk.f32.gmra.mrb[30].mxu0 %vm641_vm1, %v2885_v16 }
 0x5d3   :  { %v1731_v12 = vpop.f32.mrb[20].mxu0 }
 0x5d4   :  { %v1775_v17 = vpop.f32.mrb[16].mxu1  ;;  %v1732_v18 = vpop.f32.mrb[21].mxu0 }
 0x5d5   :  { %v1733_v19 = vadd.f32 %v1732_v18, %v1731_v12  ;;  %v1776_v20 = vpop.f32.mrb[17].mxu1 }
 0x5d6   :  { %v1777_v21 = vadd.f32 %v1776_v20, %v1775_v17 }
 0x5d7   :  { %v1221_v22 = vadd.f32 %v1733_v19, %v1608_v60  ;;  %v1734_v25 = vpop.f32.mrb[22].mxu0 }
 0x5d8   :  { %v1778_v29 = vpop.f32.mrb[18].mxu1  ;;  %v1735_v13 = vpop.f32.mrb[23].mxu0 }
 0x5d9   :  { %v1306_v26 = vadd.f32 %v1777_v21, %v1221_v22  ;;  %v1736_v30 = vadd.f32 %v1735_v13, %v1734_v25  ;;  %v1779_v31 = vpop.f32.mrb[19].mxu1 }
 0x5da   :  { %v1780_v32 = vadd.f32 %v1779_v31, %v1778_v29 }
 0x5db   :  { %1324 = vst [vmem:[%s3028_s17] sm:$0xff] %v1306_v26  ;;  %v1226_v33 = vadd.f32 %v1736_v30, %v1608_v60  ;;  %v1737_v34 = vpop.f32.mrb[24].mxu0 }
 0x5dc   :  { %v1781_v35 = vpop.f32.mrb[20].mxu1  ;;  %v1738_v9 = vpop.f32.mrb[25].mxu0 }
 0x5dd   :  { %v1311_v37 = vadd.f32 %v1780_v32, %v1226_v33  ;;  %v1739_v15 = vadd.f32 %v1738_v9, %v1737_v34  ;;  %v1782_v38 = vpop.f32.mrb[21].mxu1 }
 0x5de   :  { %v1783_v41 = vadd.f32 %v1782_v38, %v1781_v35 }
 0x5df   :  { %1325 = vst [vmem:[%s3028_s17 + $0x8] sm:$0xff] %v1311_v37  ;;  %v1231_v45 = vadd.f32 %v1739_v15, %v1608_v60  ;;  %v1740_v42 = vpop.f32.mrb[26].mxu0 }
 0x5e0   :  { %v1784_v44 = vpop.f32.mrb[22].mxu1  ;;  %v1741_v46 = vpop.f32.mrb[27].mxu0 }
 0x5e1   :  { %v1316_v10 = vadd.f32 %v1783_v41, %v1231_v45  ;;  %v1742_v47 = vadd.f32 %v1741_v46, %v1740_v42  ;;  %v1785_v48 = vpop.f32.mrb[23].mxu1 }
 0x5e2   :  { %v1786_v49 = vadd.f32 %v1785_v48, %v1784_v44 }
 0x5e3   :  { %1326 = vst [vmem:[%s3028_s17 + $0x10] sm:$0xff] %v1316_v10  ;;  %v1236_v50 = vadd.f32 %v1742_v47, %v1608_v60  ;;  %v1979_v51 = vpop.f32.mrb[28].mxu0  ;;  %v1614_v60 = vld [vmem:[%s3027_s16] ss:$0 sm:$0xff] }
 0x5e4   :  { %v1415_v52 = vadd.f32 %v1979_v51, %v1609_v27  ;;  %v1409_v53 = vpop.f32.mrb[29].mxu0 }
 0x5e5   :  { %v1321_v23 = vadd.f32 %v1786_v49, %v1236_v50  ;;  %v1410_v54 = vadd.f32 %v1609_v27, %v1409_v53 }
 0x5e6   :  { %v1433_v28 = vmul.f32 0.70710677, %v1415_v52  ;;  %v1429_v43 = vmul.f32 0.5, %v1415_v52 }
 0x5e7   :  { %1327 = vst [vmem:[%s3028_s17 + $0x18] sm:$0xff] %v1321_v23  ;;  %v1432_v55 = vmul.f32 0.70710677, %v1410_v54  ;;  %v1982_v24 = vpop.f32.mrb[30].mxu0  ;;  %v1428_v39 = vmul.f32 0.5, %v1410_v54 }
 0x5e8   :  { %2346 = verf.f32 %v1433_v28  ;;  %v1425_v57 = vadd.f32 %v1982_v24, %v1609_v27  ;;  %v1419_v58 = vpop.f32.mrb[31].mxu0 }
 0x5e9   :  { %2348 = verf.f32 %v1432_v55  ;;  %v1420_v56 = vadd.f32 %v1609_v27, %v1419_v58 }
 0x5ea   :  { %v1435_v61 = vmul.f32 0.70710677, %v1425_v57  ;;  %v1431_v11 = vmul.f32 0.5, %v1425_v57 }
 0x5eb   :  { %v1434_v59 = vmul.f32 0.70710677, %v1420_v56  ;;  %v1430_v8 = vmul.f32 0.5, %v1420_v56 }
 0x5ec   :  { %2350 = verf.f32 %v1435_v61 }
 0x5ed   :  { %2352 = verf.f32 %v1434_v59 }
 0x5f2   :  { %v2347_v62 = vpop.eup %2346 }
 0x5f3   :  { %v2349_v2 = vpop.eup %2348  ;;  %v1441_v36 = vadd.f32 1.0, %v2347_v62 }
 0x5f4   :  { %v1440_v40 = vadd.f32 1.0, %v2349_v2 }
 0x5f5   :  { %v1445_v6 = vmul.f32 %v1441_v36, %v1429_v43 }
 0x5f6   :  { %v2351_v3 = vpop.eup %2350  ;;  %v1444_v5 = vmul.f32 %v1440_v40, %v1428_v39 }
 0x5f7   :  { %v2353_v63 = vpop.eup %2352  ;;  %v1443_v7 = vadd.f32 1.0, %v2351_v3 }
 0x5f8   :  { %v1442_v0 = vadd.f32 1.0, %v2353_v63  ;;  %1999 = vmatprep.mubr.msk.f32.mxu1 %vm641_vm1, %v1444_v5 }
 0x5f9   :  { %2000 = vmatmul.mubr.msk.f32.vlgmr.msra.gmra.mrb[24].mxu1 %vm641_vm1, %v1445_v6  ;;  %v1447_v17 = vmul.f32 %v1443_v7, %v1431_v11 }
 0x5fa   :  { %v1446_v12 = vmul.f32 %v1442_v0, %v1430_v8 }
 0x5fc   :  { %2002 = vmatprep.mubr.msk.f32.mxu1 %vm641_vm1, %v1446_v12 }
 0x5fd   :  { %2003 = vmatmul.mubr.msk.f32.gmra.mrb[26].mxu1 %vm641_vm1, %v1447_v17 }
 0x6cc   :  { %v2001_v18 = vpop.f32.mrb[24].mxu1 }
 0x6cd   :  { %v1541_v19 = vpop.f32.mrb[25].mxu1  ;;  %v1547_v25 = vadd.f32 %v2001_v18, %v1614_v60 }
 0x6ce   :  { %v1542_v20 = vadd.f32 %v1614_v60, %v1541_v19 }
 0x6d0   :  { %v2004_v21 = vpop.f32.mrb[26].mxu1  ;;  %1564 = vrot.lane.b32.xlu0 %v1542_v20, %s2528_s25 }
 0x6d1   :  { %v1551_v22 = vpop.f32.mrb[27].mxu1  ;;  %v1557_v29 = vadd.f32 %v2004_v21, %v1614_v60 }
 0x6d2   :  { %v1552_v26 = vadd.f32 %v1614_v60, %v1551_v22 }
 0x6d4   :  { %1568 = vrot.lane.b32.xlu1 %v1552_v26, %s2528_s25  ;;  %1566 = vrot.lane.b32.xlu0 %v1547_v25, %s2528_s25 }
 0x6d8   :  { %1570 = vrot.lane.b32.xlu1 %v1557_v29, %s2528_s25 }
 0x742   :  { %v1565_v13 = vpop.permute.xlu0 %1564 }
 0x743   :  { %v1576_v30 = vsel %vm641_vm1, %v2875_v1, %v1565_v13 }
 0x744   :  { %1580 = vst [vmem:[%s3029_s18] sm:$0xff] %v1576_v30 }
 0x746   :  { %v1569_v31 = vpop.permute.xlu1 %1568  ;;  %v1567_v32 = vpop.permute.xlu0 %1566 }
 0x747   :  { %v1578_v33 = vsel %vm641_vm1, %v2883_v14, %v1569_v31  ;;  %v1577_v34 = vsel %vm641_vm1, %v2877_v4, %v1567_v32 }
 0x748   :  { %1582 = vst [vmem:[%s3029_s18 + $0x10] sm:$0xff] %v1578_v33  ;;  %1581 = vst [vmem:[%s3029_s18 + $0x8] sm:$0xff] %v1577_v34 }
 0x74a   :  { %v1571_v1 = vpop.permute.xlu1 %1570 }
 0x74b   :  { %v1579_v35 = vsel %vm641_vm1, %v2885_v16, %v1571_v1 }
 0x74c   :  { %1583 = vst [vmem:[%s3029_s18 + $0x18] sm:$0xff] %v1579_v35 }
 0x74d   :  { %1592 = vsyncpa [#allocation3], 1 }
 0x74e   :  { %1593 = vsyncpa [#allocation5], 1 }
 0x74f   :  { %1594 = vsyncpa [#allocation8], 1 }
 0x750   :  { %1595 = vsyncpa [#allocation11], 1 }

</bundles_post_ra>
